<compile_context>
chip_gen: v5e
topology: v5e:2x2
jax: 0.10.0
libtpu: 0.0.40
codegen_flags: <defaults>
</compile_context>

<pallas_src>
import math

import numpy as np
import jax
import jax.numpy as jnp
from jax.experimental import pallas as pl
from jax.experimental.pallas import tpu as pltpu


_RESEED_EVERY = 8      # exact sin/cos reseed interval (bounds doubling-error growth)
_LANE_CHUNK = 512      # lane sub-chunk for the matmul + store (bounds vreg pressure)


def _round_up(v, m):
    return ((v + m - 1) // m) * m


def _make_kernel(freq_plan):
    """freq_plan: static tuple of (scale: float, reseed: bool) per octave."""

    def kernel(xyz_ref, w_ref, b_ref, o_ref, enc_ref):
        # xyz_ref: (1, 3, TN) f32  lane-dense points (rows = x, y, z)
        # w_ref  : (C, 6F)    f32  nn.Linear weight, original PyTorch layout
        # b_ref  : (C, 1)     f32
        # o_ref  : (1, C, TN) f32
        # enc_ref: (6F, TN)   f32  VMEM scratch holding the positional encoding
        x = xyz_ref[0]                                   # (3, TN)

        s = None
        c = None
        for i, (scale, reseed) in enumerate(freq_plan):
            if reseed:
                ang = x if scale == 1.0 else x * scale
                s = jnp.sin(ang)                         # (3, TN)
                c = jnp.cos(ang)                         # (3, TN)
            else:
                # freq doubles each octave: sin(2a) = 2 s c, cos(2a) = 1 - 2 s^2
                s, c = 2.0 * s * c, 1.0 - 2.0 * (s * s)
            # PyTorch feature order: per freq -> [sin_x,sin_y,sin_z,cos_x,cos_y,cos_z]
            enc_ref[6 * i:6 * i + 3, :] = s
            enc_ref[6 * i + 3:6 * i + 6, :] = c

        w = w_ref[...]                                   # (C, 6F)
        b = b_ref[...]                                   # (C, 1)
        tn = o_ref.shape[2]
        for j in range(0, tn, _LANE_CHUNK):              # static unroll
            ch = min(_LANE_CHUNK, tn - j)
            out = jnp.dot(w, enc_ref[:, j:j + ch],
                          preferred_element_type=jnp.float32)   # (C, ch)
            o_ref[0, :, j:j + ch] = out + b

    return kernel


def positional_encoding(xyz, weight, bias, freqs, *, tile_n=1024):
    """xyz: (B, N, 3) f32; weight: (C, 6F) (PyTorch nn.Linear layout); bias: (C,);
    freqs: (F,) (the module's 2**linspace buffer).
    Returns (B, C, N) f32 (== PyTorch forward's transpose(1, 2))."""
    B, N, three = xyz.shape
    assert three == 3
    C, in_feat = weight.shape
    F = int(freqs.shape[0])
    assert in_feat == 6 * F

    # Static per-octave plan: exact sin/cos seed at octave 0, whenever a freq
    # is not exactly double the previous one, and every _RESEED_EVERY octaves.
    f_np = np.asarray(jax.device_get(freqs), dtype=np.float64)
    plan = []
    chain = 0
    for i in range(F):
        doubles = i > 0 and np.isclose(f_np[i], 2.0 * f_np[i - 1], rtol=1e-6, atol=0.0)
        if (not doubles) or chain >= _RESEED_EVERY:
            plan.append((float(f_np[i]), True))
            chain = 1
        else:
            plan.append((float(f_np[i]), False))
            chain += 1
    plan = tuple(plan)

    # Lane-dense input layout (cheap: 3 floats / point).
    xyz_t = jnp.transpose(xyz.astype(jnp.float32), (0, 2, 1))        # (B, 3, N)

    # N tile: big tiles amortize per-step overhead; keep >= ~8 grid steps when
    # possible so both TensorCores (v7x) and the pipeline stay fed.
    TN = _round_up(max(int(tile_n), 128), 128)
    while TN > 512 and B * pl.cdiv(N, TN) < 8:
        TN = _round_up(max(TN // 2, 512), 128)
    TN = min(TN, _round_up(N, 128))

    grid = (B, pl.cdiv(N, TN))        # ragged tail masked by Pallas (no pad/slice)

    w = weight.astype(jnp.float32)                   # original layout, no permutation
    b2 = bias.astype(jnp.float32).reshape(C, 1)

    out = pl.pallas_call(
        _make_kernel(plan),
        out_shape=jax.ShapeDtypeStruct((B, C, N), jnp.float32),
        grid_spec=pltpu.PrefetchScalarGridSpec(
            num_scalar_prefetch=0,
            grid=grid,
            in_specs=[
                pl.BlockSpec((1, 3, TN), lambda b, n: (b, 0, n)),
                pl.BlockSpec((C, 6 * F), lambda b, n: (0, 0)),
                pl.BlockSpec((C, 1), lambda b, n: (0, 0)),
            ],
            out_specs=pl.BlockSpec((1, C, TN), lambda b, n: (b, 0, n)),
            scratch_shapes=[pltpu.VMEM((6 * F, TN), jnp.float32)],
        ),
        compiler_params=pltpu.CompilerParams(
            dimension_semantics=("parallel", "parallel"),
            vmem_limit_bytes=32 * 1024 * 1024,
        ),
    )(xyz_t, w, b2)
    return out


def reference(xyz, weight, bias, freqs):
    parts = []
    for f in np.asarray(jax.device_get(freqs)):
        parts.append(jnp.sin(xyz * float(f)))
        parts.append(jnp.cos(xyz * float(f)))
    enc = jnp.concatenate(parts, axis=-1)            # (B, N, 6F)
    out = enc @ weight.T + bias                      # (B, N, C)
    return jnp.transpose(out, (0, 2, 1))             # (B, C, N)


if __name__ == "__main__":
    # Small shapes consistent with the module's forward: xyz (B, N, 3)
    B, N = 2, 1024
    channels, freq_bands = 32, 8

    key = jax.random.PRNGKey(0)
    k_xyz, k_w, k_b = jax.random.split(key, 3)

    xyz = jax.random.normal(k_xyz, (B, N, 3), dtype=jnp.float32)

    # Deterministic nn.Linear-style init: U(-1/sqrt(in), 1/sqrt(in))
    in_features = 6 * freq_bands
    bound = 1.0 / math.sqrt(in_features)
    weight = jax.random.uniform(k_w, (channels, in_features),
                                minval=-bound, maxval=bound, dtype=jnp.float32)
    bias = jax.random.uniform(k_b, (channels,),
                              minval=-bound, maxval=bound, dtype=jnp.float32)

    # freqs = 2 ** linspace(0, F-1, F)  (the module's registered buffer)
    freqs = 2.0 ** jnp.linspace(0.0, freq_bands - 1, freq_bands)

    out = positional_encoding(xyz, weight, bias, freqs, tile_n=1024)
    out = jax.block_until_ready(out)

    ref = reference(xyz, weight, bias, freqs)
    assert out.shape == (B, channels, N), out.shape
    assert jnp.allclose(out, ref, atol=1e-3, rtol=1e-3), "mismatch vs reference"

    print("KERNEL_OK")
</pallas_src>

<mosaic_0001>
module attributes {stable_mosaic.version = 11 : i64} {
  func.func @kernel(%arg0: i32, %arg1: i32, %arg2: memref<1x3x512xf32, #tpu.memory_space<vmem>>, %arg3: memref<32x48xf32, #tpu.memory_space<vmem>>, %arg4: memref<32x1xf32, #tpu.memory_space<vmem>>, %arg5: memref<1x32x512xf32, #tpu.memory_space<vmem>>, %arg6: memref<48x512xf32, #tpu.memory_space<vmem>>) attributes {dimension_semantics = [#tpu.dimension_semantics<parallel>, #tpu.dimension_semantics<parallel>], iteration_bounds = array<i64: 2, 2>, scalar_prefetch = 0 : i64, scratch_operands = 1 : i64, tpu.core_type = #tpu.core_type<tc>, window_params = [{transform_indices = @transform_0, window_bounds = array<i64: 1, 3, 512>}, {pipeline_mode = #tpu.pipeline_mode<synchronous>, transform_indices = @transform_1, window_bounds = array<i64: 32, 48>}, {pipeline_mode = #tpu.pipeline_mode<synchronous>, transform_indices = @transform_2, window_bounds = array<i64: 32, 1>}, {transform_indices = @transform_3, window_bounds = array<i64: 1, 32, 512>}]} {
    %c0 = arith.constant 0 : index
    %c0_0 = arith.constant 0 : index
    %c0_1 = arith.constant 0 : index
    %0 = vector.load %arg2[%c0, %c0_0, %c0_1] : memref<1x3x512xf32, #tpu.memory_space<vmem>>, vector<1x3x512xf32>
    %1 = vector.shape_cast %0 : vector<1x3x512xf32> to vector<3x512xf32>
    %2 = math.sin %1 : vector<3x512xf32>
    %3 = math.cos %1 : vector<3x512xf32>
    %c0_2 = arith.constant 0 : index
    %c0_3 = arith.constant 0 : index
    %4 = vector.load %arg6[%c0_2, %c0_3] : memref<48x512xf32, #tpu.memory_space<vmem>>, vector<3x512xf32>
    tpu.vector_store %arg6[%c0_2, %c0_3], %2 {strides = array<i32>} : memref<48x512xf32, #tpu.memory_space<vmem>>, vector<3x512xf32>,
    %c3 = arith.constant 3 : index
    %c0_4 = arith.constant 0 : index
    %5 = vector.load %arg6[%c3, %c0_4] : memref<48x512xf32, #tpu.memory_space<vmem>>, vector<3x512xf32>
    tpu.vector_store %arg6[%c3, %c0_4], %3 {strides = array<i32>} : memref<48x512xf32, #tpu.memory_space<vmem>>, vector<3x512xf32>,
    %cst = arith.constant 2.000000e+00 : f32
    %6 = vector.broadcast %cst : f32 to vector<3x512xf32>
    %7 = arith.mulf %6, %2 : vector<3x512xf32>
    %8 = arith.mulf %7, %3 : vector<3x512xf32>
    %9 = arith.mulf %2, %2 : vector<3x512xf32>
    %cst_5 = arith.constant 2.000000e+00 : f32
    %10 = vector.broadcast %cst_5 : f32 to vector<3x512xf32>
    %11 = arith.mulf %10, %9 : vector<3x512xf32>
    %cst_6 = arith.constant 1.000000e+00 : f32
    %12 = vector.broadcast %cst_6 : f32 to vector<3x512xf32>
    %13 = arith.subf %12, %11 : vector<3x512xf32>
    %c6 = arith.constant 6 : index
    %c0_7 = arith.constant 0 : index
    %14 = vector.load %arg6[%c6, %c0_7] : memref<48x512xf32, #tpu.memory_space<vmem>>, vector<3x512xf32>
    tpu.vector_store %arg6[%c6, %c0_7], %8 {strides = array<i32>} : memref<48x512xf32, #tpu.memory_space<vmem>>, vector<3x512xf32>,
    %c9 = arith.constant 9 : index
    %c0_8 = arith.constant 0 : index
    %15 = vector.load %arg6[%c9, %c0_8] : memref<48x512xf32, #tpu.memory_space<vmem>>, vector<3x512xf32>
    tpu.vector_store %arg6[%c9, %c0_8], %13 {strides = array<i32>} : memref<48x512xf32, #tpu.memory_space<vmem>>, vector<3x512xf32>,
    %cst_9 = arith.constant 2.000000e+00 : f32
    %16 = vector.broadcast %cst_9 : f32 to vector<3x512xf32>
    %17 = arith.mulf %16, %8 : vector<3x512xf32>
    %18 = arith.mulf %17, %13 : vector<3x512xf32>
    %19 = arith.mulf %8, %8 : vector<3x512xf32>
    %cst_10 = arith.constant 2.000000e+00 : f32
    %20 = vector.broadcast %cst_10 : f32 to vector<3x512xf32>
    %21 = arith.mulf %20, %19 : vector<3x512xf32>
    %cst_11 = arith.constant 1.000000e+00 : f32
    %22 = vector.broadcast %cst_11 : f32 to vector<3x512xf32>
    %23 = arith.subf %22, %21 : vector<3x512xf32>
    %c12 = arith.constant 12 : index
    %c0_12 = arith.constant 0 : index
    %24 = vector.load %arg6[%c12, %c0_12] : memref<48x512xf32, #tpu.memory_space<vmem>>, vector<3x512xf32>
    tpu.vector_store %arg6[%c12, %c0_12], %18 {strides = array<i32>} : memref<48x512xf32, #tpu.memory_space<vmem>>, vector<3x512xf32>,
    %c15 = arith.constant 15 : index
    %c0_13 = arith.constant 0 : index
    %25 = vector.load %arg6[%c15, %c0_13] : memref<48x512xf32, #tpu.memory_space<vmem>>, vector<3x512xf32>
    tpu.vector_store %arg6[%c15, %c0_13], %23 {strides = array<i32>} : memref<48x512xf32, #tpu.memory_space<vmem>>, vector<3x512xf32>,
    %cst_14 = arith.constant 2.000000e+00 : f32
    %26 = vector.broadcast %cst_14 : f32 to vector<3x512xf32>
    %27 = arith.mulf %26, %18 : vector<3x512xf32>
    %28 = arith.mulf %27, %23 : vector<3x512xf32>
    %29 = arith.mulf %18, %18 : vector<3x512xf32>
    %cst_15 = arith.constant 2.000000e+00 : f32
    %30 = vector.broadcast %cst_15 : f32 to vector<3x512xf32>
    %31 = arith.mulf %30, %29 : vector<3x512xf32>
    %cst_16 = arith.constant 1.000000e+00 : f32
    %32 = vector.broadcast %cst_16 : f32 to vector<3x512xf32>
    %33 = arith.subf %32, %31 : vector<3x512xf32>
    %c18 = arith.constant 18 : index
    %c0_17 = arith.constant 0 : index
    %34 = vector.load %arg6[%c18, %c0_17] : memref<48x512xf32, #tpu.memory_space<vmem>>, vector<3x512xf32>
    tpu.vector_store %arg6[%c18, %c0_17], %28 {strides = array<i32>} : memref<48x512xf32, #tpu.memory_space<vmem>>, vector<3x512xf32>,
    %c21 = arith.constant 21 : index
    %c0_18 = arith.constant 0 : index
    %35 = vector.load %arg6[%c21, %c0_18] : memref<48x512xf32, #tpu.memory_space<vmem>>, vector<3x512xf32>
    tpu.vector_store %arg6[%c21, %c0_18], %33 {strides = array<i32>} : memref<48x512xf32, #tpu.memory_space<vmem>>, vector<3x512xf32>,
    %cst_19 = arith.constant 2.000000e+00 : f32
    %36 = vector.broadcast %cst_19 : f32 to vector<3x512xf32>
    %37 = arith.mulf %36, %28 : vector<3x512xf32>
    %38 = arith.mulf %37, %33 : vector<3x512xf32>
    %39 = arith.mulf %28, %28 : vector<3x512xf32>
    %cst_20 = arith.constant 2.000000e+00 : f32
    %40 = vector.broadcast %cst_20 : f32 to vector<3x512xf32>
    %41 = arith.mulf %40, %39 : vector<3x512xf32>
    %cst_21 = arith.constant 1.000000e+00 : f32
    %42 = vector.broadcast %cst_21 : f32 to vector<3x512xf32>
    %43 = arith.subf %42, %41 : vector<3x512xf32>
    %c24 = arith.constant 24 : index
    %c0_22 = arith.constant 0 : index
    %44 = vector.load %arg6[%c24, %c0_22] : memref<48x512xf32, #tpu.memory_space<vmem>>, vector<3x512xf32>
    tpu.vector_store %arg6[%c24, %c0_22], %38 {strides = array<i32>} : memref<48x512xf32, #tpu.memory_space<vmem>>, vector<3x512xf32>,
    %c27 = arith.constant 27 : index
    %c0_23 = arith.constant 0 : index
    %45 = vector.load %arg6[%c27, %c0_23] : memref<48x512xf32, #tpu.memory_space<vmem>>, vector<3x512xf32>
    tpu.vector_store %arg6[%c27, %c0_23], %43 {strides = array<i32>} : memref<48x512xf32, #tpu.memory_space<vmem>>, vector<3x512xf32>,
    %cst_24 = arith.constant 2.000000e+00 : f32
    %46 = vector.broadcast %cst_24 : f32 to vector<3x512xf32>
    %47 = arith.mulf %46, %38 : vector<3x512xf32>
    %48 = arith.mulf %47, %43 : vector<3x512xf32>
    %49 = arith.mulf %38, %38 : vector<3x512xf32>
    %cst_25 = arith.constant 2.000000e+00 : f32
    %50 = vector.broadcast %cst_25 : f32 to vector<3x512xf32>
    %51 = arith.mulf %50, %49 : vector<3x512xf32>
    %cst_26 = arith.constant 1.000000e+00 : f32
    %52 = vector.broadcast %cst_26 : f32 to vector<3x512xf32>
    %53 = arith.subf %52, %51 : vector<3x512xf32>
    %c30 = arith.constant 30 : index
    %c0_27 = arith.constant 0 : index
    %54 = vector.load %arg6[%c30, %c0_27] : memref<48x512xf32, #tpu.memory_space<vmem>>, vector<3x512xf32>
    tpu.vector_store %arg6[%c30, %c0_27], %48 {strides = array<i32>} : memref<48x512xf32, #tpu.memory_space<vmem>>, vector<3x512xf32>,
    %c33 = arith.constant 33 : index
    %c0_28 = arith.constant 0 : index
    %55 = vector.load %arg6[%c33, %c0_28] : memref<48x512xf32, #tpu.memory_space<vmem>>, vector<3x512xf32>
    tpu.vector_store %arg6[%c33, %c0_28], %53 {strides = array<i32>} : memref<48x512xf32, #tpu.memory_space<vmem>>, vector<3x512xf32>,
    %cst_29 = arith.constant 2.000000e+00 : f32
    %56 = vector.broadcast %cst_29 : f32 to vector<3x512xf32>
    %57 = arith.mulf %56, %48 : vector<3x512xf32>
    %58 = arith.mulf %57, %53 : vector<3x512xf32>
    %59 = arith.mulf %48, %48 : vector<3x512xf32>
    %cst_30 = arith.constant 2.000000e+00 : f32
    %60 = vector.broadcast %cst_30 : f32 to vector<3x512xf32>
    %61 = arith.mulf %60, %59 : vector<3x512xf32>
    %cst_31 = arith.constant 1.000000e+00 : f32
    %62 = vector.broadcast %cst_31 : f32 to vector<3x512xf32>
    %63 = arith.subf %62, %61 : vector<3x512xf32>
    %c36 = arith.constant 36 : index
    %c0_32 = arith.constant 0 : index
    %64 = vector.load %arg6[%c36, %c0_32] : memref<48x512xf32, #tpu.memory_space<vmem>>, vector<3x512xf32>
    tpu.vector_store %arg6[%c36, %c0_32], %58 {strides = array<i32>} : memref<48x512xf32, #tpu.memory_space<vmem>>, vector<3x512xf32>,
    %c39 = arith.constant 39 : index
    %c0_33 = arith.constant 0 : index
    %65 = vector.load %arg6[%c39, %c0_33] : memref<48x512xf32, #tpu.memory_space<vmem>>, vector<3x512xf32>
    tpu.vector_store %arg6[%c39, %c0_33], %63 {strides = array<i32>} : memref<48x512xf32, #tpu.memory_space<vmem>>, vector<3x512xf32>,
    %cst_34 = arith.constant 2.000000e+00 : f32
    %66 = vector.broadcast %cst_34 : f32 to vector<3x512xf32>
    %67 = arith.mulf %66, %58 : vector<3x512xf32>
    %68 = arith.mulf %67, %63 : vector<3x512xf32>
    %69 = arith.mulf %58, %58 : vector<3x512xf32>
    %cst_35 = arith.constant 2.000000e+00 : f32
    %70 = vector.broadcast %cst_35 : f32 to vector<3x512xf32>
    %71 = arith.mulf %70, %69 : vector<3x512xf32>
    %cst_36 = arith.constant 1.000000e+00 : f32
    %72 = vector.broadcast %cst_36 : f32 to vector<3x512xf32>
    %73 = arith.subf %72, %71 : vector<3x512xf32>
    %c42 = arith.constant 42 : index
    %c0_37 = arith.constant 0 : index
    %74 = vector.load %arg6[%c42, %c0_37] : memref<48x512xf32, #tpu.memory_space<vmem>>, vector<3x512xf32>
    tpu.vector_store %arg6[%c42, %c0_37], %68 {strides = array<i32>} : memref<48x512xf32, #tpu.memory_space<vmem>>, vector<3x512xf32>,
    %c45 = arith.constant 45 : index
    %c0_38 = arith.constant 0 : index
    %75 = vector.load %arg6[%c45, %c0_38] : memref<48x512xf32, #tpu.memory_space<vmem>>, vector<3x512xf32>
    tpu.vector_store %arg6[%c45, %c0_38], %73 {strides = array<i32>} : memref<48x512xf32, #tpu.memory_space<vmem>>, vector<3x512xf32>,
    %c0_39 = arith.constant 0 : index
    %c0_40 = arith.constant 0 : index
    %76 = vector.load %arg3[%c0_39, %c0_40] : memref<32x48xf32, #tpu.memory_space<vmem>>, vector<32x48xf32>
    %c0_41 = arith.constant 0 : index
    %c0_42 = arith.constant 0 : index
    %77 = vector.load %arg4[%c0_41, %c0_42] : memref<32x1xf32, #tpu.memory_space<vmem>>, vector<32x1xf32>
    %c0_43 = arith.constant 0 : index
    %c0_44 = arith.constant 0 : index
    %78 = vector.load %arg6[%c0_43, %c0_44] : memref<48x512xf32, #tpu.memory_space<vmem>>, vector<48x512xf32>
    %cst_45 = arith.constant dense<0.000000e+00> : vector<32x512xf32>
    %79 = tpu.matmul %76, %78, %cst_45 {dimension_numbers = #tpu.dot_dimension_numbers<[1], [0], [0], [1], [0, 0, 1, 1], [], []>} : vector<32x48xf32>, vector<48x512xf32>, vector<32x512xf32> -> vector<32x512xf32>
    %80 = vector.broadcast %77 : vector<32x1xf32> to vector<32x512xf32>
    %81 = arith.addf %79, %80 : vector<32x512xf32>
    %c0_46 = arith.constant 0 : index
    %c0_47 = arith.constant 0 : index
    %c0_48 = arith.constant 0 : index
    %82 = vector.load %arg5[%c0_46, %c0_47, %c0_48] : memref<1x32x512xf32, #tpu.memory_space<vmem>>, vector<1x32x512xf32>
    %83 = vector.shape_cast %82 : vector<1x32x512xf32> to vector<32x512xf32>
    %84 = vector.shape_cast %81 : vector<32x512xf32> to vector<1x32x512xf32>
    tpu.vector_store %arg5[%c0_46, %c0_47, %c0_48], %84 {strides = array<i32>} : memref<1x32x512xf32, #tpu.memory_space<vmem>>, vector<1x32x512xf32>,
    return
  }
  func.func @transform_0(%arg0: i32, %arg1: i32) -> (i32, i32, i32) {
    %c0_i32 = arith.constant 0 : i32
    %c0_i32_0 = arith.constant 0 : i32
    return %arg0, %c0_i32, %arg1 : i32, i32, i32
  }
  func.func @transform_1(%arg0: i32, %arg1: i32) -> (i32, i32) {
    %c0_i32 = arith.constant 0 : i32
    %c0_i32_0 = arith.constant 0 : i32
    %c0_i32_1 = arith.constant 0 : i32
    return %c0_i32, %c0_i32_0 : i32, i32
  }
  func.func @transform_2(%arg0: i32, %arg1: i32) -> (i32, i32) {
    %c0_i32 = arith.constant 0 : i32
    %c0_i32_0 = arith.constant 0 : i32
    %c0_i32_1 = arith.constant 0 : i32
    return %c0_i32, %c0_i32_0 : i32, i32
  }
  func.func @transform_3(%arg0: i32, %arg1: i32) -> (i32, i32, i32) {
    %c0_i32 = arith.constant 0 : i32
    %c0_i32_0 = arith.constant 0 : i32
    return %arg0, %c0_i32, %arg1 : i32, i32, i32
  }
}

</mosaic_0001>

<bundles_post_ra>
// kernel: tpu_custom_call.1
= control target key start
LH: loop header
LB: loop body
LE: loop exit
PB: predicated region body
PF: predicated region fallthrough
CT: control target
= control target key end

     0   :  { %8 = vsyncpa [#allocation4], 0  ;;  %s2252_s0 = inlined_call_operand.vmem [shape: f32[2,3,1024], index: 0, kind: input, shape index: {}]   ;;  %s2253_s1 = inlined_call_operand.vmem [shape: f32[32,48], index: 1, kind: input, shape index: {}]   ;;  %s2254_s2 = inlined_call_operand.vmem [shape: f32[32,1], index: 2, kind: input, shape index: {}]   ;;  %s2255_s3 = inlined_call_operand.hbm [shape: f32[2,32,1024], index: 3, kind: output, shape index: {}]  }
   0x1   :  { %10 = vsyncpa [#allocation4 + $0x1], 0  ;;  %s1777_s12 = smov 0   ;;  %s1779_s13 = smov 0  }
   0x2   :  { %s1781_s14 = smov 0   ;;  %s1783_s15 = smov 0  }
   0x3   :  { %s1785_s16 = smov 0   ;;  %s1787_s17 = smov 0  }
   0x4   :  { %s1789_s18 = smov 0   ;;  %s1791_s19 = smov 0  }
   0x5 LB: > { %s1525_s20 = sadd.s32 4294967295, %s1745_s19   ;;  %s1526_s21 = sadd.s32 4294967294, %s1745_s19   ;;  %s1745_s19 = sphi %s1791_s19, %s16_s19   ;;  %s1741_s18 = sphi %s1789_s18, %s2266_s18   ;;  %s1737_s17 = sphi %s1787_s17, %s2265_s17   ;;  %s1733_s16 = sphi %s1785_s16, %s2264_s16   ;;  %s1729_s15 = sphi %s1783_s15, %s2263_s15   ;;  %s1725_s14 = sphi %s1781_s14, %s2262_s14   ;;  %s1721_s13 = sphi %s1779_s13, %s2261_s13   ;;  %s1717_s12 = sphi %s1777_s12, %s2260_s12  }
   0x6   : > { %s25_s22 = sadd.s32 1, %s1737_s17  ;;  %s28_s23 = sadd.s32 1, %s1741_s18 }
   0x7   : > { %p26_p0 = scmp.ge.s32.totalorder %s25_s22, 2  ;;  %p117_p1 = scmp.ne.s32.totalorder %s1725_s14, %s1721_s13 }
   0x8   : > { %p118_p2 = scmp.eq.s32.totalorder %s1525_s20, 3  ;;  %p123_p5 = scmp.ne.s32.totalorder %s1721_s13, %s1717_s12 }
   0x9   : > { %s2268_s22 = smov (%p26_p0, %s25_s22), 0  ;;  %s2270_s23 = smov (!%p26_p0, %s28_s23), %s1741_s18 }
   0xa   : > { %s103_s24 = ssub.s32 %s1737_s17, %s2268_s22  ;;  %p1828_p3 = por %p118_p2, %p117_p1 }
   0xb   : > { %p30_p4 = scmp.ge.s32.totalorder %s2270_s23, 2  ;;  %p124_p6 = scmp.eq.s32.totalorder %s1526_s21, 3 }
   0xc   : > { %p1529_p7 = scmp.ge.s32.totalorder %s1745_s19, 1  ;;  %p161_p9 = scmp.lt.s32.totalorder %s1745_s19, 5 }
   0xd   : > { %s2272_s23 = smov (%p30_p4, %s2270_s23), 0  ;;  %p1837_p8 = por %p124_p6, %p123_p5 }
   0xe   : > { %s102_s27 = ssub.s32 %s1741_s18, %s2272_s23  ;;  %s107_s28 = sadd.s32 1, %s1725_s14 }
   0xf   : > { %s104_s29 = sor.u32 %s103_s24, %s102_s27  ;;  %p162_p10 = pnand %p1529_p7, %p161_p9 }
  0x10   : > { %p105_p11 = scmp.eq.s32.totalorder %s104_s29, 0  ;;  %s1849_s4 = sshll.u32 (!%p162_p10), %s1729_s15, 2 }
  0x11   : > { %165 = sbr.rel (%p162_p10) target bundleno = 479 (0x1df), region = 32  ;;  %p190_p12 = scmp.lt.s32.totalorder (!%p162_p10), %s1733_s16, 1 }
  0x12   : > { %s1846_s30 = scalar_select %p105_p11, %s1725_s14, %s107_s28  }
  0x13   : > { %p192_p13 = scmp.lt.s32.totalorder (!%p162_p10), %s1849_s4, 7  ;;  %s186_s24 = sand.u32 (!%p162_p10), 1, %s1721_s13  }
  0x14   : > { %s1530_s27 = sshll.u32 (!%p162_p10), %s186_s24, 7  ;;  %s1564_s29 = sshll.u32 (!%p162_p10), %s1733_s16, 5 }
  0x15   : > { %s2188_s28 = scalar_lea.vmem (!%p162_p10), [#allocation3], %s1530_s27  ;;  %s1426_s10 = scalar_lea.sflag (!%p162_p10), [#allocation4], %s186_s24 }
  0x16   : > { %s191_s5 = scalar_select %p190_p12, %s1733_s16, 1  ;;  %v1747_v0 = vmov 0   ;;  %v1748_v24 = vmov 683565275   ;;  %v1749_v26 = vmov 2475754826  }
  0x17   : > { %s193_s6 = scalar_select %p192_p13, %s1849_s4, 7  ;;  %1649 = vset.pattern.permute.xlu0 %v1747_v0  ;;  %1650 = vset.pattern.permute.xlu1 %v1747_v0  ;;  %v1750_v28 = vmov 2131351028   ;;  %v1751_v30 = vmov 2102212464  }
  0x18   : > { %s1532_s7 = sshll.u32 %s191_s5, 3  ;;  %v1752_v32 = vmov 920167782   ;;  %v1753_v41 = vmov 1326507024   ;;  %s1437_s5 = sadd.s32 %s1564_s29, %s1849_s4 }
  0x19   : > { %s195_s8 = sadd.s32 %s1532_s7, %s193_s6  ;;  %s1565_s6 = sshll.u32 %s1437_s5, 3 }
  0x1a   : > { %s1533_s9 = sshll.u32 %s195_s8, 2  ;;  %s1439_s4 = scalar_lea.hbm %s2255_s3, %s1565_s6 }
  0x1b   : > { %s197_s20 = scalar_lea.vmem %s2252_s0, %s1533_s9  ;;  %s1440_s8 = sshll.u32 %s2188_s28, 4  ;;  %s1441_s8 = int_to_ptr.vmem [resolvable:$true] %s1440_s8 }
  0x1c   : > { %v1860_v1 = vld [vmem:[%s197_s20] sm:$0x77]  ;;  %v1862_v2 = vld [vmem:[%s197_s20 + $0x8] sm:$0x77]  ;;  %s1442_s9 = sshll.u32 %s1439_s4, 4  ;;  %s1671_s27 = scalar_lea.hbm %s2255_s3, 512  ;;  %s1443_s9 = int_to_ptr.hbm [resolvable:$true] %s1442_s9 }
  0x1d   : > { %v202_v3 = vand.u32 2147483647, %v1860_v1  ;;  %v205_v4 = vand.u32 2139095040, %v1860_v1  ;;  %v357_v5 = vand.u32 2147483647, %v1862_v2  ;;  %v360_v6 = vand.u32 2139095040, %v1862_v2 }
  0x1e   : > { %s1665_s11 = sshra.s32 %s1443_s9, 4  ;;  %s1666_s11 = int_to_ptr.hbm [resolvable:$true] %s1665_s11 }
  0x1f   : > { %v206_v7 = vshrl.u32 %v205_v4, 23  ;;  %v209_v8 = vand.u32 8388607, %v202_v3  ;;  %v361_v9 = vshrl.u32 %v360_v6, 23  ;;  %v364_v13 = vand.u32 8388607, %v357_v5  ;;  %p1672_p4 = scmp.lt.s32.totalorder %s1666_s11, %s2255_s3 }
  0x20   : > { %s1667_s20 = scalar_lea.hbm %s1666_s11, 128 }
  0x21   : > { %v1534_v10 = vadd.s32 4294967169, %v206_v7  ;;  %v210_v11 = vor.u32 8388608, %v209_v8  ;;  %v1537_v12 = vadd.s32 4294967169, %v361_v9  ;;  %v365_v18 = vor.u32 8388608, %v364_v13  ;;  %p1668_p0 = scmp.ne.s32.totalorder %s1666_s11, %s1667_s20  ;;  %p1673_p5 = scmp.lt.s32.totalorder %s1671_s27, %s1667_s20 }
  0x23   : > { %v212_v14 = vadd.s32 1, %v1534_v10  ;;  %v367_v15 = vadd.s32 1, %v1537_v12  ;;  %v1872_v17 = vshll.u32 %v210_v11, 8  ;;  %v1882_v35 = vshll.u32 %v365_v18, 8  ;;  %p1669_p1 = pnand %p1668_p0, %p1828_p3  ;;  %p1674_p6 = por %p1673_p5, %p1672_p4 }
  0x25   : > { %vm213_vm0 = vcmp.gt.s32.totalorder %v212_v14, 0  ;;  %vm368_vm1 = vcmp.gt.s32.totalorder %v367_v15, 0  ;;  %v251_v34 = vand.u32 65535, %v1872_v17  ;;  %v252_v39 = vshrl.u32 %v1872_v17, 16  ;;  %p1670_p2 = pneg %p1669_p1 }
  0x26   : > { %v214_v16 = vsel %vm213_vm0, %v212_v14, 0  ;;  %v369_v20 = vsel %vm368_vm1, %v367_v15, 0 }
  0x27   : > { %v216_v19 = vand.u32 31, %v214_v16  ;;  %v1874_v21 = vshrl.u32 %v214_v16, 5  ;;  %v1876_v22 = vand.u32 31, %v369_v20  ;;  %v1900_v52 = vshrl.u32 %v369_v20, 5  ;;  %p1675_p7 = pnand %p1674_p6, %p1670_p2 }
  0x29   : > { %v217_v23 = vsub.s32 32, %v216_v19  ;;  %v219_v25 = vshll.u32 %v1748_v24, %v216_v19  ;;  %v222_v27 = vshll.u32 %v1749_v26, %v216_v19  ;;  %v225_v29 = vshll.u32 %v1750_v28, %v216_v19 }
  0x2a   : > { %v228_v31 = vshll.u32 %v1751_v30, %v216_v19  ;;  %v231_v33 = vshll.u32 %v1752_v32, %v216_v19  ;;  %vm234_vm2 = vcmp.lt.s32.totalorder %v1874_v21, 1  ;;  %vm237_vm3 = vcmp.lt.s32.totalorder %v1874_v21, 4 }
  0x2b   : > { %v220_v36 = vshrl.u32 %v1749_v26, %v217_v23  ;;  %v223_v37 = vshrl.u32 %v1750_v28, %v217_v23  ;;  %v226_v38 = vshrl.u32 %v1751_v30, %v217_v23  ;;  %v229_v40 = vshrl.u32 %v1752_v32, %v217_v23 }
  0x2c   : > { %v232_v42 = vshrl.u32 %v1753_v41, %v217_v23  ;;  %v1891_v46 = vsub.s32 32, %v1876_v22  ;;  %v218_v47 = vshrl.u32 %v1748_v24, %v217_v23  ;;  %vm236_vm4 = vcmp.lt.s32.totalorder %v1874_v21, 3 }
  0x2d   : > { %v221_v43 = vor.u32 %v220_v36, %v219_v25  ;;  %v224_v44 = vor.u32 %v223_v37, %v222_v27  ;;  %v227_v45 = vor.u32 %v226_v38, %v225_v29  ;;  %v230_v48 = vor.u32 %v229_v40, %v228_v31 }
  0x2e   : > { %v233_v49 = vor.u32 %v232_v42, %v231_v33  ;;  %vm235_vm5 = vcmp.lt.s32.totalorder %v1874_v21, 2  ;;  %v374_v55 = vshll.u32 %v1748_v24, %v1876_v22  ;;  %v377_v56 = vshll.u32 %v1749_v26, %v1876_v22 }
  0x2f   : > { %v242_v50 = vsel %vm234_vm2, %v221_v43, %v224_v44  ;;  %v246_v51 = vsel %vm234_vm2, %v224_v44, %v227_v45  ;;  %v243_v53 = vsel %vm237_vm3, %v230_v48, 920167782  ;;  %v239_v57 = vsel %vm237_vm3, %v227_v45, 2102212464 }
  0x30   : > { %v247_v54 = vsel %vm237_vm3, %v233_v49, 1326507024  ;;  %v244_v58 = vsel %vm236_vm4, %v227_v45, %v243_v53  ;;  %v375_v60 = vshrl.u32 %v1749_v26, %v1891_v46  ;;  %v238_v61 = vsel %vm234_vm2, %v218_v47, %v221_v43 }
  0x31   : > { %v248_v59 = vsel %vm236_vm4, %v230_v48, %v247_v54  ;;  %v245_v62 = vsel %vm235_vm5, %v242_v50, %v244_v58  ;;  %v378_v4 = vshrl.u32 %v1750_v28, %v1891_v46  ;;  %v240_v10 = vsel %vm236_vm4, %v224_v44, %v239_v57 }
  0x32   : > { %v249_v63 = vsel %vm235_vm5, %v246_v51, %v248_v59  ;;  %v275_v8 = vand.u32 65535, %v245_v62  ;;  %v276_v9 = vshrl.u32 %v245_v62, 16  ;;  %v1925_v11 = vor.u32 %v375_v60, %v374_v55 }
  0x33   : > { %v253_v6 = vand.u32 65535, %v249_v63  ;;  %v254_v7 = vshrl.u32 %v249_v63, 16  ;;  %v1927_v12 = vor.u32 %v378_v4, %v377_v56  ;;  %v380_v13 = vshll.u32 %v1750_v28, %v1876_v22 }
  0x34   : > { %v381_v18 = vshrl.u32 %v1751_v30, %v1891_v46  ;;  %v277_v20 = vmul.u32 %v275_v8, %v251_v34  ;;  %v278_v23 = vmul.u32 %v276_v9, %v251_v34  ;;  %v279_v25 = vmul.u32 %v275_v8, %v252_v39 }
  0x35   : > { %v255_v14 = vmul.u32 %v253_v6, %v251_v34  ;;  %v256_v15 = vmul.u32 %v254_v7, %v251_v34  ;;  %v257_v16 = vmul.u32 %v253_v6, %v252_v39  ;;  %v258_v19 = vmul.u32 %v254_v7, %v252_v39 }
  0x36   : > { %v280_v31 = vmul.u32 %v276_v9, %v252_v39  ;;  %v281_v36 = vshll.u32 %v278_v23, 16  ;;  %v282_v37 = vshrl.u32 %v278_v23, 16  ;;  %v283_v38 = vshll.u32 %v279_v25, 16 }
  0x37   : > { %v259_v26 = vshll.u32 %v256_v15, 16  ;;  %v260_v27 = vshrl.u32 %v256_v15, 16  ;;  %v261_v29 = vshll.u32 %v257_v16, 16  ;;  %v262_v33 = vshrl.u32 %v257_v16, 16 }
  0x38   : > { %v284_v40 = vshrl.u32 %v279_v25, 16  ;;  %v383_v42 = vshll.u32 %v1751_v30, %v1876_v22  ;;  %vm285_vm7 = vc.u32 %v277_v20, %v281_v36  ;;  %v287_v44 = vadd.s32 %v281_v36, %v277_v20 }
  0x39   : > { %vm263_vm6 = vc.u32 %v255_v14, %v259_v26  ;;  %v265_v28 = vadd.s32 %v259_v26, %v255_v14  ;;  %v384_v34 = vshrl.u32 %v1752_v32, %v1891_v46  ;;  %v286_v39 = vsel %vm285_vm7, 1, %v1747_v0 }
  0x3a   : > { %v264_v43 = vsel %vm263_vm6, 1, %v1747_v0  ;;  %v386_v47 = vshll.u32 %v1752_v32, %v1876_v22  ;;  %v288_v49 = vadd.s32 %v286_v39, %v280_v31  ;;  %vm289_vm9 = vc.u32 %v287_v44, %v283_v38 }
  0x3b   : > { %v266_v45 = vadd.s32 %v264_v43, %v258_v19  ;;  %vm267_vm8 = vc.u32 %v265_v28, %v261_v29  ;;  %v382_v50 = vor.u32 %v381_v18, %v380_v13  ;;  %v290_v51 = vsel %vm289_vm9, 1, %v1747_v0 }
  0x3c   : > { %v268_v48 = vsel %vm267_vm8, 1, %v1747_v0  ;;  %v385_v53 = vor.u32 %v384_v34, %v383_v42  ;;  %v387_v54 = vshrl.u32 %v1753_v41, %v1891_v46  ;;  %v1944_v55 = vadd.s32 %v287_v44, %v283_v38 }
  0x3d   : > { %v270_v30 = vadd.s32 %v268_v48, %v266_v45  ;;  %v292_v56 = vadd.s32 %v290_v51, %v288_v49  ;;  %vm389_vm10 = vcmp.lt.s32.totalorder %v1900_v52, 1  ;;  %vm391_vm11 = vcmp.lt.s32.totalorder %v1900_v52, 3 }
  0x3e   : > { %v388_v32 = vor.u32 %v387_v54, %v386_v47  ;;  %vm390_vm12 = vcmp.lt.s32.totalorder %v1900_v52, 2  ;;  %vm392_vm13 = vcmp.lt.s32.totalorder %v1900_v52, 4  ;;  %v241_v57 = vsel %vm235_vm5, %v238_v61, %v240_v10 }
  0x3f   : > { %v271_v22 = vadd.s32 %v270_v30, %v260_v27  ;;  %v293_v58 = vadd.s32 %v292_v56, %v282_v37  ;;  %v397_v41 = vsel %vm389_vm10, %v1925_v11, %v1927_v12  ;;  %v398_v59 = vsel %vm392_vm13, %v385_v53, 920167782 }
  0x40   : > { %v399_v62 = vsel %vm391_vm11, %v382_v50, %v398_v59  ;;  %v401_v63 = vsel %vm389_vm10, %v1927_v12, %v382_v50  ;;  %v406_v21 = vand.u32 65535, %v1882_v35  ;;  %v402_v6 = vsel %vm392_vm13, %v388_v32, 1326507024 }
  0x41   : > { %v1958_v60 = vadd.s32 %v271_v22, %v262_v33  ;;  %v294_v61 = vadd.s32 %v293_v58, %v284_v40  ;;  %v400_v4 = vsel %vm390_vm12, %v397_v41, %v399_v62  ;;  %v407_v7 = vshrl.u32 %v1882_v35, 16 }
  0x42   : > { %v295_v8 = vmul.u32 %v1872_v17, %v241_v57  ;;  %v403_v9 = vsel %vm391_vm11, %v385_v53, %v402_v6  ;;  %v430_v10 = vand.u32 65535, %v400_v4  ;;  %v431_v15 = vshrl.u32 %v400_v4, 16 }
  0x43   : > { %vm297_vm14 = vc.u32 %v1958_v60, %v1944_v55  ;;  %v298_v13 = vadd.s32 1, %v294_v61  ;;  %v404_v14 = vsel %vm390_vm12, %v401_v63, %v403_v9  ;;  %v373_v16 = vshrl.u32 %v1748_v24, %v1891_v46 }
  0x44   : > { %v408_v18 = vand.u32 65535, %v404_v14  ;;  %v409_v19 = vshrl.u32 %v404_v14, 16  ;;  %v432_v23 = vmul.u32 %v430_v10, %v406_v21  ;;  %v433_v17 = vmul.u32 %v431_v15, %v406_v21 }
  0x45   : > { %v299_v20 = vsel %vm297_vm14, %v298_v13, %v294_v61  ;;  %v434_v25 = vmul.u32 %v430_v10, %v407_v7  ;;  %v394_v37 = vsel %vm392_vm13, %v382_v50, 2102212464  ;;  %v393_v24 = vsel %vm389_vm10, %v373_v16, %v1925_v11 }
  0x46   : > { %v300_v26 = vadd.s32 %v299_v20, %v295_v8  ;;  %v410_v27 = vmul.u32 %v408_v18, %v406_v21  ;;  %v411_v29 = vmul.u32 %v409_v19, %v406_v21  ;;  %v412_v31 = vmul.u32 %v408_v18, %v407_v7 }
  0x47   : > { %v436_v33 = vshll.u32 %v433_v17, 16  ;;  %v413_v38 = vmul.u32 %v409_v19, %v407_v7  ;;  %v435_v40 = vmul.u32 %v431_v15, %v407_v7  ;;  %v438_v42 = vshll.u32 %v434_v25, 16 }
  0x48   : > { %v301_v36 = vadd.s32 536870912, %v300_v26  ;;  %v414_v28 = vshll.u32 %v411_v29, 16  ;;  %v416_v46 = vshll.u32 %v412_v31, 16  ;;  %v395_v34 = vsel %vm391_vm11, %v1927_v12, %v394_v37 }
  0x49   : > { %vm440_vm0 = vc.u32 %v432_v23, %v436_v33  ;;  %v442_v47 = vadd.s32 %v436_v33, %v432_v23  ;;  %v415_v11 = vshrl.u32 %v411_v29, 16  ;;  %v437_v30 = vshrl.u32 %v433_v17, 16 }
  0x4a   : > { %v1985_v43 = vshrl.u32 %v301_v36, 30  ;;  %vm418_vm15 = vc.u32 %v410_v27, %v414_v28  ;;  %v420_v44 = vadd.s32 %v414_v28, %v410_v27  ;;  %v441_v39 = vsel %vm440_vm0, 1, %v1747_v0 }
  0x4b   : > { %v419_v45 = vsel %vm418_vm15, 1, %v1747_v0  ;;  %v443_v51 = vadd.s32 %v441_v39, %v435_v40  ;;  %vm444_vm2 = vc.u32 %v442_v47, %v438_v42  ;;  %v417_v54 = vshrl.u32 %v412_v31, 16 }
  0x4c   : > { %v303_v48 = vshll.u32 %v1985_v43, 30  ;;  %v421_v49 = vadd.s32 %v419_v45, %v413_v38  ;;  %vm422_vm1 = vc.u32 %v420_v44, %v416_v46  ;;  %v445_v12 = vsel %vm444_vm2, 1, %v1747_v0 }
  0x4d   : > { %v423_v50 = vsel %vm422_vm1, 1, %v1747_v0  ;;  %v439_v22 = vshrl.u32 %v434_v25, 16  ;;  %v447_v32 = vadd.s32 %v445_v12, %v443_v51  ;;  %v446_v41 = vadd.s32 %v442_v47, %v438_v42 }
  0x4e   : > { %v304_v53 = vsub.s32 %v300_v26, %v303_v48  ;;  %v425_v56 = vadd.s32 %v423_v50, %v421_v49  ;;  %v396_v59 = vsel %vm390_vm12, %v393_v24, %v395_v34  ;;  %v296_v0 = vadd.s32 %v1944_v55, %v1958_v60 }
  0x4f   : > { %v448_v62 = vadd.s32 %v447_v32, %v437_v30  ;;  %v450_v6 = vmul.u32 %v1882_v35, %v396_v59  ;;  %v326_v31 = vsub.s32 4, %v1985_v43  ;;  %vm204_vm7 = vcmp.lt.s32.totalorder %v1860_v1, 0 }
  0x50   : > { %vm305_vm3 = vcmp.lt.s32.totalorder %v304_v53, 0  ;;  %v306_v57 = vsub.s32 0, %v304_v53  ;;  %v426_v58 = vadd.s32 %v425_v56, %v415_v11  ;;  %vm203_vm8 = vcmp.le.f32.partialorder %v202_v3, 0.7853982 }
  0x51   : > { %v449_v4 = vadd.s32 %v448_v62, %v439_v22  ;;  %v327_v28 = vsel %vm204_vm7, %v326_v31, %v1985_v43  ;;  %vm359_vm11 = vcmp.lt.s32.totalorder %v1862_v2, 0  ;;  %vm2012_vm13 = vcmp.le.f32.partialorder %v357_v5, 0.7853982 }
  0x52   : > { %v307_v63 = vsel %vm305_vm3, %v306_v57, %v304_v53  ;;  %v427_v21 = vadd.s32 %v426_v58, %v417_v54  ;;  %v329_v44 = vsel %vm203_vm8, 0, %v327_v28  ;;  %vm345_vm15 = vweird.f32 %v1860_v1 }
  0x53   : > { %v308_v61 = vclz %v307_v63  ;;  %v453_v8 = vadd.s32 1, %v449_v4  ;;  %v346_v30 = vadd.s32 3, %v329_v44 }
  0x54   : > { %vm452_vm4 = vc.u32 %v427_v21, %v446_v41  ;;  %v451_v42 = vadd.s32 %v446_v41, %v427_v21 }
  0x55   : > { %v1535_v7 = vadd.s32 4294967294, %v308_v61  ;;  %v454_v9 = vsel %vm452_vm4, %v453_v8, %v449_v4  ;;  %v347_v32 = vand.u32 3, %v346_v30  ;;  %v656_v61 = vand.u32 3, %v329_v44 }
  0x56   : > { %v455_v13 = vadd.s32 %v454_v9, %v450_v6 }
  0x57   : > { %vm1536_vm5 = vcmp.lt.s32.totalorder %v1535_v7, 0  ;;  %vm352_vm10 = vcmp.eq.s32.totalorder %v347_v32, 2  ;;  %vm349_vm12 = vcmp.eq.s32.totalorder %v347_v32, 0  ;;  %vm348_vm14 = vcmp.lt.s32.totalorder %v347_v32, 2 }
  0x58   : > { %v311_v10 = vsel %vm1536_vm5, 0, %v1535_v7  ;;  %v456_v16 = vadd.s32 536870912, %v455_v13  ;;  %vm658_vm0 = vcmp.eq.s32.totalorder %v656_v61, 0  ;;  %vm661_vm1 = vcmp.eq.s32.totalorder %v656_v61, 2 }
  0x59   : > { %v312_v14 = vsub.s32 32, %v311_v10  ;;  %v313_v52 = vshll.u32 %v304_v53, %v311_v10  ;;  %v316_v15 = vsub.s32 4294967266, %v311_v10  ;;  %vm657_vm2 = vcmp.lt.s32.totalorder %v656_v61, 2 }
  0x5a   : > { %v2000_v20 = vshrl.u32 %v456_v16, 30 }
  0x5b   : > { %v314_v18 = vshrl.u32 %v296_v0, %v312_v14  ;;  %v317_v19 = vadd.s32 127, %v316_v15 }
  0x5c   : > { %v458_v17 = vshll.u32 %v2000_v20, 30 }
  0x5d   : > { %v315_v23 = vor.u32 %v314_v18, %v313_v52  ;;  %v318_v35 = vshll.u32 %v317_v19, 23 }
  0x5e   : > { %v459_v27 = vsub.s32 %v455_v13, %v458_v17  ;;  %v481_v13 = vsub.s32 4, %v2000_v20 }
  0x5f   : > { %v319_v25 = vor.u32 4788187, %v318_v35  ;;  %v322_v26 = vcvt.s32.f32 %v315_v23 }
  0x60   : > { %vm460_vm6 = vcmp.lt.s32.totalorder %v459_v27, 0  ;;  %v461_v60 = vsub.s32 0, %v459_v27  ;;  %v482_v35 = vsel %vm359_vm11, %v481_v13, %v2000_v20 }
  0x61   : > { %v320_v55 = vand.u32 2147483647, %v319_v25 }
  0x62   : > { %v462_v33 = vsel %vm460_vm6, %v461_v60, %v459_v27  ;;  %vm500_vm6 = vweird.f32 %v1862_v2 }
  0x63   : > { %v323_v29 = vmul.f32 %v322_v26, %v320_v55  ;;  %v463_v37 = vclz %v462_v33 }
  0x65   : > { %v324_v36 = vxor.u32 2147483648, %v323_v29  ;;  %v1538_v24 = vadd.s32 4294967294, %v463_v37 }
  0x67   : > { %v325_v38 = vsel %vm204_vm7, %v324_v36, %v323_v29  ;;  %vm1539_vm9 = vcmp.lt.s32.totalorder %v1538_v24, 0 }
  0x68   : > { %v328_v46 = vsel %vm203_vm8, %v1860_v1, %v325_v38  ;;  %v466_v34 = vsel %vm1539_vm9, 0, %v1538_v24 }
  0x69   : > { %v330_v40 = vmul.f32 %v328_v46, %v328_v46  ;;  %v467_v47 = vsub.s32 32, %v466_v34  ;;  %v468_v48 = vshll.u32 %v459_v27, %v466_v34  ;;  %v471_v11 = vsub.s32 4294967266, %v466_v34 }
  0x6a   : > { %v484_v27 = vsel %vm2012_vm13, 0, %v482_v35 }
  0x6b   : > { %v331_v45 = vmul.f32 -0.001358992, %v330_v40  ;;  %v338_v39 = vmul.f32 -0.00019511016, %v330_v40  ;;  %v469_v50 = vshrl.u32 %v451_v42, %v467_v47  ;;  %v472_v51 = vadd.s32 127, %v471_v11 }
  0x6c   : > { %v501_v36 = vadd.s32 3, %v484_v27 }
  0x6d   : > { %v332_v49 = vadd.f32 0.041655596, %v331_v45  ;;  %v339_v3 = vadd.f32 0.008332121, %v338_v39  ;;  %v470_v54 = vor.u32 %v469_v50, %v468_v48  ;;  %v473_v56 = vshll.u32 %v472_v51, 23 }
  0x6e   : > { %v810_v48 = vand.u32 3, %v484_v27 }
  0x6f   : > { %v333_v53 = vmul.f32 %v332_v49, %v330_v40  ;;  %v340_v43 = vmul.f32 %v339_v3, %v330_v40  ;;  %v474_v57 = vor.u32 4788187, %v473_v56  ;;  %v477_v58 = vcvt.s32.f32 %v470_v54 }
  0x70   : > { %vm812_vm7 = vcmp.eq.s32.totalorder %v810_v48, 0  ;;  %vm815_vm8 = vcmp.eq.s32.totalorder %v810_v48, 2  ;;  %vm811_vm9 = vcmp.lt.s32.totalorder %v810_v48, 2 }
  0x71   : > { %v334_v12 = vadd.f32 -0.4999988, %v333_v53  ;;  %v341_v22 = vadd.f32 -0.16666654, %v340_v43  ;;  %v475_v62 = vand.u32 2147483647, %v474_v57 }
  0x73   : > { %v335_v41 = vmul.f32 %v334_v12, %v330_v40  ;;  %v342_v59 = vmul.f32 %v341_v22, %v330_v40  ;;  %v478_v4 = vmul.f32 %v477_v58, %v475_v62  ;;  %v502_v40 = vand.u32 3, %v501_v36 }
  0x75   : > { %v336_v63 = vadd.f32 1.0, %v335_v41  ;;  %v343_v21 = vadd.f32 1.0, %v342_v59  ;;  %v479_v0 = vxor.u32 2147483648, %v478_v4  ;;  %vm507_vm3 = vcmp.eq.s32.totalorder %v502_v40, 2 }
  0x76   : > { %vm504_vm4 = vcmp.eq.s32.totalorder %v502_v40, 0  ;;  %vm503_vm5 = vcmp.lt.s32.totalorder %v502_v40, 2 }
  0x77   : > { %v344_v6 = vmul.f32 %v343_v21, %v328_v46  ;;  %v353_v7 = vxor.u32 2147483648, %v336_v63  ;;  %v480_v14 = vsel %vm359_vm11, %v479_v0, %v478_v4 }
  0x78   : > { %v483_v5 = vsel %vm2012_vm13, %v1862_v2, %v480_v14 }
  0x79   : > { %v350_v9 = vxor.u32 2147483648, %v344_v6  ;;  %v354_v10 = vsel %vm352_vm10, %v353_v7, %v344_v6  ;;  %v485_v16 = vmul.f32 %v483_v5, %v483_v5  ;;  %v663_v23 = vsel %vm661_vm1, %v353_v7, %v344_v6 }
  0x7a   : > { %vm1280_vm10 = vcmask 392192  }
  0x7b   : > { %v351_v52 = vsel %vm349_vm12, %v336_v63, %v350_v9  ;;  %v660_v19 = vsel %vm658_vm0, %v336_v63, %v350_v9  ;;  %v486_v17 = vmul.f32 -0.001358992, %v485_v16  ;;  %v493_v25 = vmul.f32 -0.00019511016, %v485_v16 }
  0x7c   : > { %v355_v15 = vsel %vm348_vm14, %v351_v52, %v354_v10  ;;  %v664_v26 = vsel %vm657_vm2, %v660_v19, %v663_v23 }
  0x7d   : > { %v356_v18 = vsel %vm345_vm15, nan, %v355_v15  ;;  %v487_v55 = vadd.f32 0.041655596, %v486_v17  ;;  %v494_v60 = vadd.f32 0.008332121, %v493_v25  ;;  %v665_v31 = vsel %vm345_vm15, nan, %v664_v26 }
  0x7e   : > { %822 = vst [vmem:[#allocation1] ss:$2 sm:$0xff] %v356_v18  ;;  %v858_v20 = vmul.f32 2.0, %v356_v18  ;;  %v862_v45 = vmul.f32 %v356_v18, %v356_v18 }
  0x7f   : > { %v488_v29 = vmul.f32 %v487_v55, %v485_v16  ;;  %v495_v33 = vmul.f32 %v494_v60, %v485_v16 }
  0x80   : > { %v860_v34 = vmul.f32 %v858_v20, %v665_v31  ;;  %v864_v3 = vmul.f32 2.0, %v862_v45 }
  0x81   : > { %v489_v37 = vadd.f32 -0.4999988, %v488_v29  ;;  %v496_v46 = vadd.f32 -0.16666654, %v495_v33 }
  0x82   : > { %v866_v43 = vsub.f32 1.0, %v864_v3  ;;  %v914_v57 = vmul.f32 2.0, %v860_v34  ;;  %v918_v62 = vmul.f32 %v860_v34, %v860_v34 }
  0x83   : > { %v490_v24 = vmul.f32 %v489_v37, %v485_v16  ;;  %v497_v44 = vmul.f32 %v496_v46, %v485_v16 }
  0x84   : > { %v916_v59 = vmul.f32 %v914_v57, %v866_v43  ;;  %v920_v7 = vmul.f32 2.0, %v918_v62 }
  0x85   : > { %v825_v38 = vld.sshfl [vmem:[#allocation1] sm:$0xff pattern:$0x75316420]  ;;  %v826_v28 = vld.sshfl [vmem:[#allocation1 + $0x8] sm:$0xff pattern:$0x75316420] }
  0x86   : > { %839 = vst [vmem:[#allocation1] ss:$2 sm:$0xff] %v665_v31  ;;  %v491_v42 = vadd.f32 1.0, %v490_v24  ;;  %v498_v39 = vadd.f32 1.0, %v497_v44  ;;  %v922_v9 = vsub.f32 1.0, %v920_v7  ;;  %v971_v18 = vmul.f32 %v916_v59, %v916_v59 }
  0x87   : > { %833 = vst [vmem:[#allocation2 + $0xb0] sm:$0x7] %v825_v38 }
  0x88   : > { %834 = vst [vmem:[#allocation2] sm:$0x7] %v826_v28  ;;  %v508_v47 = vxor.u32 2147483648, %v491_v42  ;;  %v499_v1 = vmul.f32 %v498_v39, %v483_v5  ;;  %v967_v5 = vmul.f32 2.0, %v916_v59  ;;  %v973_v26 = vmul.f32 2.0, %v971_v18 }
  0x8a   : > { %v505_v50 = vxor.u32 2147483648, %v499_v1  ;;  %v509_v30 = vsel %vm507_vm3, %v508_v47, %v499_v1  ;;  %v817_v12 = vsel %vm815_vm8, %v508_v47, %v499_v1  ;;  %v969_v16 = vmul.f32 %v967_v5, %v922_v9 }
  0x8b   : > { %v975_v60 = vsub.f32 1.0, %v973_v26 }
  0x8c   : > { %v506_v51 = vsel %vm504_vm4, %v491_v42, %v505_v50  ;;  %v814_v56 = vsel %vm812_vm7, %v491_v42, %v505_v50  ;;  %v1019_v38 = vmul.f32 2.0, %v969_v16  ;;  %v1023_v24 = vmul.f32 %v969_v16, %v969_v16 }
  0x8d   : > { %v2032_v11 = vld.sshfl [vmem:[#allocation1] sm:$0xff pattern:$0x75316420]  ;;  %v2034_v49 = vld.sshfl [vmem:[#allocation1 + $0x8] sm:$0xff pattern:$0x75316420]  ;;  %v510_v53 = vsel %vm503_vm5, %v506_v51, %v509_v30  ;;  %v818_v58 = vsel %vm811_vm9, %v814_v56, %v817_v12 }
  0x8e   : > { %870 = vst [vmem:[#allocation1] ss:$2 sm:$0xff] %v860_v34  ;;  %v511_v54 = vsel %vm500_vm6, nan, %v510_v53  ;;  %v819_v41 = vsel %vm500_vm6, nan, %v818_v58  ;;  %v1021_v20 = vmul.f32 %v1019_v38, %v975_v60  ;;  %v1025_v45 = vmul.f32 2.0, %v1023_v24 }
  0x8f   : > { %824 = vst [vmem:[#allocation1 + $0x10] ss:$2 sm:$0xff] %v511_v54  ;;  %v859_v61 = vmul.f32 2.0, %v511_v54  ;;  %v863_v0 = vmul.f32 %v511_v54, %v511_v54 }
  0x90   : > { %v1027_v1 = vsub.f32 1.0, %v1025_v45  ;;  %v1067_v53 = vmul.f32 2.0, %v1021_v20  ;;  %v1071_v56 = vmul.f32 %v1021_v20, %v1021_v20 }
  0x91   : > { %v861_v8 = vmul.f32 %v859_v61, %v819_v41  ;;  %v865_v13 = vmul.f32 2.0, %v863_v0 }
  0x92   : > { %v1069_v54 = vmul.f32 %v1067_v53, %v1027_v1  ;;  %v1073_v62 = vmul.f32 2.0, %v1071_v56 }
  0x93   : > { %v867_v15 = vsub.f32 1.0, %v865_v13  ;;  %v915_v35 = vmul.f32 2.0, %v861_v8  ;;  %v919_v55 = vmul.f32 %v861_v8, %v861_v8 }
  0x94   : > { %v1075_v61 = vsub.f32 1.0, %v1073_v62 }
  0x95   : > { %v2039_v22 = vld.sshfl [vmem:[#allocation1] sm:$0xff pattern:$0x75316420]  ;;  %v2041_v32 = vld.sshfl [vmem:[#allocation1 + $0x8] sm:$0xff pattern:$0x75316420]  ;;  %v917_v27 = vmul.f32 %v915_v35, %v867_v15 }
  0x96   : > { %895 = vst [vmem:[#allocation1] ss:$2 sm:$0xff] %v866_v43  ;;  %v827_v63 = vld.sshfl [vmem:[#allocation1 + $0x10] sm:$0xff pattern:$0x75316420]  ;;  %v921_v33 = vmul.f32 2.0, %v919_v55 }
  0x97   : > { %v828_v21 = vld.sshfl [vmem:[#allocation1 + $0x18] sm:$0xff pattern:$0x75316420]  ;;  %835 = vst [vmem:[#allocation2 + $0x10] sm:$0x7] %v827_v63  ;;  %v968_v42 = vmul.f32 2.0, %v917_v27  ;;  %v972_v47 = vmul.f32 %v917_v27, %v917_v27 }
  0x98   : > { %841 = vst [vmem:[#allocation1 + $0x10] ss:$2 sm:$0xff] %v819_v41  ;;  %v923_v28 = vsub.f32 1.0, %v921_v33 }
  0x99   : > { %836 = vst [vmem:[#allocation2 + $0x48] sm:$0x7] %v828_v21  ;;  %v974_v50 = vmul.f32 2.0, %v972_v47 }
  0x9a   : > { %v970_v39 = vmul.f32 %v968_v42, %v923_v28 }
  0x9b   : > { %v976_v43 = vsub.f32 1.0, %v974_v50 }
  0x9c   : > { %v1020_v58 = vmul.f32 2.0, %v970_v39  ;;  %v1024_v21 = vmul.f32 %v970_v39, %v970_v39 }
  0x9d   : > { %v2045_v4 = vld.sshfl [vmem:[#allocation1] sm:$0xff pattern:$0x75316420]  ;;  %v2047_v6 = vld.sshfl [vmem:[#allocation1 + $0x8] sm:$0xff pattern:$0x75316420] }
  0x9e   : > { %927 = vst [vmem:[#allocation1 + $0x1] ss:$2 sm:$0xff] %v916_v59  ;;  %v1022_v63 = vmul.f32 %v1020_v58, %v976_v43  ;;  %v1026_v0 = vmul.f32 2.0, %v1024_v21 }
  0x9f   : > { %v2049_v10 = vld.sshfl [vmem:[#allocation1 + $0x10] sm:$0xff pattern:$0x75316420]  ;;  %v2051_v2 = vld.sshfl [vmem:[#allocation1 + $0x18] sm:$0xff pattern:$0x75316420] }
  0xa0   : > { %872 = vst [vmem:[#allocation1 + $0x10] ss:$2 sm:$0xff] %v861_v8  ;;  %v1068_v35 = vmul.f32 2.0, %v1022_v63  ;;  %v1072_v33 = vmul.f32 %v1022_v63, %v1022_v63 }
  0xa2   : > { %v1074_v24 = vmul.f32 2.0, %v1072_v33 }
  0xa4   : > { %v1076_v45 = vsub.f32 1.0, %v1074_v24 }
  0xa5   : > { %v930_v14 = vld.sshfl [vmem:[#allocation1] sm:$0xff pattern:$0x75316420]  ;;  %v931_v52 = vld.sshfl [vmem:[#allocation1 + $0x8] sm:$0xff pattern:$0x75316420] }
  0xa6   : > { %944 = vst [vmem:[#allocation1] ss:$2 sm:$0xff] %v922_v9 }
  0xa7   : > { %938 = vst [vmem:[#allocation2 + $0x60] sm:$0x70] %v930_v14  ;;  %v2053_v19 = vld.sshfl [vmem:[#allocation1 + $0x10] sm:$0xff pattern:$0x75316420]  ;;  %v1123_v14 = vmul.f32 2.0, %v1069_v54 }
  0xa8   : > { %939 = vst [vmem:[#allocation2 + $0x28] sm:$0x70] %v931_v52  ;;  %v2055_v23 = vld.sshfl [vmem:[#allocation1 + $0x18] sm:$0xff pattern:$0x75316420]  ;;  %v1028_v52 = vsub.f32 1.0, %v1026_v0 }
  0xa9   : > { %897 = vst [vmem:[#allocation1 + $0x10] ss:$2 sm:$0xff] %v867_v15  ;;  %v1125_v5 = vmul.f32 %v1123_v14, %v1075_v61  ;;  %v1127_v15 = vmul.f32 %v1069_v54, %v1069_v54 }
  0xab   : > { %v1129_v55 = vmul.f32 2.0, %v1127_v15  ;;  %v1176_v42 = vmul.f32 2.0, %v1125_v5  ;;  %v1180_v47 = vmul.f32 %v1125_v5, %v1125_v5 }
  0xad   : > { %v2057_v17 = vld.sshfl [vmem:[#allocation1] sm:$0xff pattern:$0x75316420]  ;;  %v2059_v25 = vld.sshfl [vmem:[#allocation1 + $0x8] sm:$0xff pattern:$0x75316420] }
  0xae   : > { %979 = vst [vmem:[#allocation1] ss:$2 sm:$0xff] %v969_v16  ;;  %v1131_v38 = vsub.f32 1.0, %v1129_v55 }
  0xb0   : > { %v2061_v29 = vld.sshfl [vmem:[#allocation1 + $0x10] sm:$0xff pattern:$0x75316420]  ;;  %v2063_v31 = vld.sshfl [vmem:[#allocation1 + $0x18] sm:$0xff pattern:$0x75316420] }
  0xb1   : > { %929 = vst [vmem:[#allocation1 + $0x11] ss:$2 sm:$0xff] %v917_v27 }
  0xb5   : > { %v2065_v36 = vld.sshfl [vmem:[#allocation1] sm:$0xff pattern:$0x75316420]  ;;  %v2067_v37 = vld.sshfl [vmem:[#allocation1 + $0x8] sm:$0xff pattern:$0x75316420] }
  0xb6   : > { %1000 = vst [vmem:[#allocation1] ss:$2 sm:$0xff] %v975_v60  ;;  %v1070_v60 = vmul.f32 %v1068_v35, %v1028_v52 }
  0xb8   : > { %v932_v46 = vld.sshfl [vmem:[#allocation1 + $0x10] sm:$0xff pattern:$0x75316420]  ;;  %v933_v40 = vld.sshfl [vmem:[#allocation1 + $0x18] sm:$0xff pattern:$0x75316420] }
  0xb9   : > { %946 = vst [vmem:[#allocation1 + $0x10] ss:$2 sm:$0xff] %v923_v28  ;;  %v1124_v56 = vmul.f32 2.0, %v1070_v60 }
  0xba   : > { %940 = vst [vmem:[#allocation2 + $0x40] sm:$0x70] %v932_v46 }
  0xbb   : > { %941 = vst [vmem:[#allocation2 + $0x78] sm:$0x70] %v933_v40  ;;  %v1126_v62 = vmul.f32 %v1124_v56, %v1076_v45 }
  0xbd   : > { %v2069_v44 = vld.sshfl [vmem:[#allocation1] sm:$0xff pattern:$0x75316420]  ;;  %v2071_v34 = vld.sshfl [vmem:[#allocation1 + $0x8] sm:$0xff pattern:$0x75316420] }
  0xbe   : > { %1031 = vst [vmem:[#allocation1] ss:$2 sm:$0xff] %v1021_v20 }
  0xc0   : > { %v2073_v48 = vld.sshfl [vmem:[#allocation1 + $0x10] sm:$0xff pattern:$0x75316420]  ;;  %v2075_v3 = vld.sshfl [vmem:[#allocation1 + $0x18] sm:$0xff pattern:$0x75316420] }
  0xc1   : > { %981 = vst [vmem:[#allocation1 + $0x10] ss:$2 sm:$0xff] %v970_v39  ;;  %v1178_v39 = vmul.f32 %v1176_v42, %v1131_v38 }
  0xc5   : > { %v1034_v30 = vld.sshfl [vmem:[#allocation1] sm:$0xff pattern:$0x75316420]  ;;  %v1035_v51 = vld.sshfl [vmem:[#allocation1 + $0x8] sm:$0xff pattern:$0x75316420] }
  0xc6   : > { %1048 = vst [vmem:[#allocation1] ss:$2 sm:$0xff] %v1027_v1 }
  0xc7   : > { %1042 = vst [vmem:[#allocation2 + $0x38] sm:$0x7] %v1034_v30 }
  0xc8   : > { %1043 = vst [vmem:[#allocation2 + $0x50] sm:$0x7] %v1035_v51  ;;  %v2077_v12 = vld.sshfl [vmem:[#allocation1 + $0x10] sm:$0xff pattern:$0x75316420] }
  0xc9   : > { %v2079_v57 = vld.sshfl [vmem:[#allocation1 + $0x18] sm:$0xff pattern:$0x75316420] }
  0xca   : > { %1002 = vst [vmem:[#allocation1 + $0x10] ss:$2 sm:$0xff] %v976_v43  ;;  %v1182_v43 = vmul.f32 2.0, %v1180_v47  ;;  %v1181_v47 = vmul.f32 %v1126_v62, %v1126_v62 }
  0xcc   : > { %v1184_v58 = vsub.f32 1.0, %v1182_v43  ;;  %v1183_v43 = vmul.f32 2.0, %v1181_v47 }
  0xcd   : > { %v2081_v41 = vld.sshfl [vmem:[#allocation1] sm:$0xff pattern:$0x75316420]  ;;  %v2083_v59 = vld.sshfl [vmem:[#allocation1 + $0x8] sm:$0xff pattern:$0x75316420] }
  0xce   : > { %1079 = vst [vmem:[#allocation1] ss:$2 sm:$0xff] %v1069_v54  ;;  %v1185_v56 = vsub.f32 1.0, %v1183_v43  ;;  %v1234_v43 = vld [vmem:[%s2254_s2 + $0x10] sm:$0xff] }
  0xcf   : > { %1272 = vperm.xlu1 %1650, %v1234_v43  }
  0xd1   : > { %v2085_v7 = vld.sshfl [vmem:[#allocation1 + $0x10] sm:$0xff pattern:$0x75316420]  ;;  %v2087_v8 = vld.sshfl [vmem:[#allocation1 + $0x18] sm:$0xff pattern:$0x75316420] }
  0xd2   : > { %1033 = vst [vmem:[#allocation1 + $0x10] ss:$2 sm:$0xff] %v1022_v63  ;;  %v1010_v47 = vrot.slane %v2087_v8, 3  ;;  %v879_v8 = vrot.slane %v2053_v19, 2  ;;  %v1232_v19 = vld [vmem:[%s2254_s2] sm:$0xff] }
  0xd3   : > { %1262 = vperm.xlu0 %1649, %v1232_v19  }
  0xd4   : > { %1018 = vst [vmem:[#allocation2 + $0x98] sm:$0xe0] %v1010_v47 }
  0xd5   : > { %v2089_v9 = vld.sshfl [vmem:[#allocation1] sm:$0xff pattern:$0x75316420]  ;;  %v2091_v13 = vld.sshfl [vmem:[#allocation1 + $0x8] sm:$0xff pattern:$0x75316420] }
  0xd6   : > { %1104 = vst [vmem:[#allocation1] ss:$2 sm:$0xff] %v1075_v61  ;;  %v1087_v42 = vrot.slane %v2091_v13, 2 }
  0xd7   : > { %891 = vst [vmem:[#allocation2 + $0x40] sm:$0x1] %v879_v8 }
  0xd8   : > { %1099 = vst [vmem:[#allocation2 + $0x68] sm:$0x1] %v1087_v42 }
  0xd9   : > { %v1036_v16 = vld.sshfl [vmem:[#allocation1 + $0x10] sm:$0xff pattern:$0x75316420]  ;;  %v1037_v18 = vld.sshfl [vmem:[#allocation1 + $0x18] sm:$0xff pattern:$0x75316420] }
  0xda   : > { %1050 = vst [vmem:[#allocation1 + $0x10] ss:$2 sm:$0xff] %v1028_v52 }
  0xdb   : > { %1044 = vst [vmem:[#allocation2 + $0x70] sm:$0x7] %v1036_v16 }
  0xdc   : > { %1045 = vst [vmem:[#allocation2 + $0xa0] sm:$0x7] %v1037_v18 }
  0xdd   : > { %v2093_v26 = vld.sshfl [vmem:[#allocation1] sm:$0xff pattern:$0x75316420]  ;;  %v2095_v27 = vld.sshfl [vmem:[#allocation1 + $0x8] sm:$0xff pattern:$0x75316420] }
  0xde   : > { %1136 = vst [vmem:[#allocation1 + $0x1] ss:$2 sm:$0xff] %v1125_v5  ;;  %v1128_v5 = vmul.f32 %v1070_v60, %v1070_v60 }
  0xdf   : > { %1095 = vst [vmem:[#allocation2 + $0x50] sm:$0xc0] %v1087_v42 }
  0xe0   : > { %v1130_v15 = vmul.f32 2.0, %v1128_v5  ;;  %887 = vst [vmem:[#allocation2 + $0x10] sm:$0xc0] %v879_v8 }
  0xe1   : > { %v2097_v28 = vld.sshfl [vmem:[#allocation1 + $0x10] sm:$0xff pattern:$0x75316420]  ;;  %v2099_v20 = vld.sshfl [vmem:[#allocation1 + $0x18] sm:$0xff pattern:$0x75316420] }
  0xe2   : > { %1081 = vst [vmem:[#allocation1 + $0x10] ss:$2 sm:$0xff] %v1070_v60  ;;  %v1132_v33 = vsub.f32 1.0, %v1130_v15  ;;  %v1177_v60 = vmul.f32 2.0, %v1126_v62  ;;  %v1055_v15 = vrot.slane %v2081_v41, 5  ;;  %v986_v41 = vrot.slane %v2065_v36, 6 }
  0xe4   : > { %1063 = vst [vmem:[#allocation2 + $0x38] sm:$0x38] %v1055_v15 }
  0xe5   : > { %v1139_v46 = vld.sshfl [vmem:[#allocation1] sm:$0xff pattern:$0x75316420]  ;;  %v1140_v40 = vld.sshfl [vmem:[#allocation1 + $0x8] sm:$0xff pattern:$0x75316420] }
  0xe6   : > { %1153 = vst [vmem:[#allocation1] ss:$2 sm:$0xff] %v1131_v38 }
  0xe7   : > { %1147 = vst [vmem:[#allocation2 + $0xa8] sm:$0x70] %v1139_v46  ;;  %v1086_v46 = vrot.slane %v2089_v9, 2 }
  0xe8   : > { %1148 = vst [vmem:[#allocation2 + $0x68] sm:$0x70] %v1140_v40  ;;  %v1111_v40 = vrot.slane %v2093_v26, 7 }
  0xe9   : > { %v2101_v1 = vld.sshfl [vmem:[#allocation1 + $0x10] sm:$0xff pattern:$0x75316420]  ;;  %v2103_v50 = vld.sshfl [vmem:[#allocation1 + $0x18] sm:$0xff pattern:$0x75316420] }
  0xea   : > { %1106 = vst [vmem:[#allocation1 + $0x10] ss:$2 sm:$0xff] %v1076_v45  ;;  %v1112_v45 = vrot.slane %v2095_v27, 7  ;;  %v1088_v27 = vrot.slane %v2101_v1, 2  ;;  %v1089_v5 = vrot.slane %v2103_v50, 2  ;;  %v1058_v50 = vrot.slane %v2099_v20, 5 }
  0xeb   : > { %1098 = vst [vmem:[#allocation2 + $0xa8] sm:$0x1] %v1086_v46 }
  0xec   : > { %1119 = vst [vmem:[#allocation2 + $0xa8] sm:$0xe] %v1111_v40 }
  0xed   : > { %v1156_v30 = vld.sshfl [vmem:[#allocation1] sm:$0xff pattern:$0x75316420]  ;;  %v1157_v51 = vld.sshfl [vmem:[#allocation1 + $0x8] sm:$0xff pattern:$0x75316420] }
  0xee   : > { %v1160_v53 = vrot.slane %v1156_v30, 1  ;;  %1188 = vst [vmem:[#allocation1] ss:$2 sm:$0xff] %v1178_v39  ;;  %v1161_v54 = vrot.slane %v1157_v51, 1  ;;  %v1179_v39 = vmul.f32 %v1177_v60, %v1132_v33  ;;  %v953_v60 = vrot.slane %v2073_v48, 1 }
  0xef   : > { %1094 = vst [vmem:[#allocation2 + $0x38] sm:$0xc0] %v1086_v46  ;;  %v989_v48 = vrot.slane %v2079_v57, 6  ;;  %v903_v57 = vrot.slane %v2047_v6, 7 }
  0xf0   : > { %1172 = vst [vmem:[#allocation2 + $0x80] sm:$0x3] %v1160_v53 }
  0xf1   : > { %1168 = vst [vmem:[#allocation2 + $0xa8] sm:$0x80] %v1160_v53  ;;  %v2105_v63 = vld.sshfl [vmem:[#allocation1 + $0x10] sm:$0xff pattern:$0x75316420] }
  0xf2   : > { %1173 = vst [vmem:[#allocation2 + $0xb8] sm:$0x3] %v1161_v54  ;;  %v2107_v21 = vld.sshfl [vmem:[#allocation1 + $0x18] sm:$0xff pattern:$0x75316420] }
  0xf3   : > { %1169 = vst [vmem:[#allocation2 + $0x68] sm:$0x80] %v1161_v54  ;;  %v1114_v1 = vrot.slane %v2107_v21, 7  ;;  %v951_v21 = vrot.slane %v2057_v17, 1  ;;  %v1008_v17 = vrot.slane %v2071_v34, 3  ;;  %v1009_v34 = vrot.slane %v2085_v7, 3 }
  0xf4   : > { %1138 = vst [vmem:[#allocation1 + $0x11] ss:$2 sm:$0xff] %v1126_v62  ;;  %v1113_v62 = vrot.slane %v2105_v63, 7  ;;  %v902_v7 = vrot.slane %v2045_v4, 7  ;;  %v880_v4 = vrot.slane %v2055_v23, 2  ;;  %v848_v23 = vrot.slane %v2049_v10, 5 }
  0xf5   : > { %v1191_v61 = vld.sshfl [vmem:[#allocation1] sm:$0xff pattern:$0x75316420]  ;;  %v1192_v0 = vld.sshfl [vmem:[#allocation1 + $0x8] sm:$0xff pattern:$0x75316420] }
  0xf6   : > { %v1195_v14 = vrot.slane %v1191_v61, 6  ;;  %1209 = vst [vmem:[#allocation1] ss:$2 sm:$0xff] %v1184_v58  ;;  %v1196_v52 = vrot.slane %v1192_v0, 6 }
  0xf7   : > { %1120 = vst [vmem:[#allocation2 + $0x68] sm:$0xe] %v1112_v45  ;;  %v954_v45 = vrot.slane %v2075_v3, 1  ;;  %v878_v3 = vrot.slane %v2041_v32, 2  ;;  %v905_v32 = vrot.slane %v2063_v31, 7  ;;  %v849_v31 = vrot.slane %v2051_v2, 5 }
  0xf8   : > { %1203 = vst [vmem:[#allocation2 + $0x80] sm:$0x1c] %v1195_v14  ;;  %v1252_v13 = vld [vmem:[#allocation2 + $0xa8] sm:$0xff]  ;;  %v1228_v2 = vld [vmem:[%s2253_s1] sm:$0xff] }
  0xf9   : > { %1204 = vst [vmem:[#allocation2 + $0xb8] sm:$0x1c] %v1196_v52 }
  0xfa   : > { %1100 = vst [vmem:[#allocation2 + $0x30] sm:$0x1] %v1088_v27 }
  0xfb   : > { %v1141_v38 = vld.sshfl [vmem:[#allocation1 + $0x10] sm:$0xff pattern:$0x75316420]  ;;  %v1142_v24 = vld.sshfl [vmem:[#allocation1 + $0x18] sm:$0xff pattern:$0x75316420] }
  0xfc   : > { %1149 = vst [vmem:[#allocation2 + $0x30] sm:$0x70] %v1141_v38  ;;  %v1007_v38 = vrot.slane %v2069_v44, 3 }
  0xfd   : > { %v1212_v16 = vld.sshfl [vmem:[#allocation1] sm:$0xff pattern:$0x75316420]  ;;  %v1213_v18 = vld.sshfl [vmem:[#allocation1 + $0x8] sm:$0xff pattern:$0x75316420] }
  0xfe   : > { %v1216_v35 = vrot.slane %v1212_v16, 3  ;;  %v1217_v55 = vrot.slane %v1213_v18, 3  ;;  %1155 = vst [vmem:[#allocation1 + $0x10] ss:$2 sm:$0xff] %v1132_v33  ;;  %v1253_v58 = vld [vmem:[#allocation2 + $0x68] sm:$0xff]  ;;  %v1057_v33 = vrot.slane %v2097_v28, 5 }
  0xff   : > { %1150 = vst [vmem:[#allocation2 + $0x58] sm:$0x70] %v1142_v24  ;;  %v952_v24 = vrot.slane %v2059_v25, 1  ;;  %v987_v28 = vrot.slane %v2067_v37, 6  ;;  %v988_v37 = vrot.slane %v2077_v12, 6  ;;  %v877_v12 = vrot.slane %v2039_v22, 2 }
 0x100   : > { %1224 = vst [vmem:[#allocation2 + $0x80] sm:$0xe0] %v1216_v35  ;;  %v904_v22 = vrot.slane %v2061_v29, 7  ;;  %v847_v29 = vrot.slane %v2034_v49, 5  ;;  %v1233_v49 = vld [vmem:[%s2254_s2 + $0x8] sm:$0xff] }
 0x101   : > { %1225 = vst [vmem:[#allocation2 + $0xb8] sm:$0xe0] %v1217_v55  ;;  %v1056_v55 = vrot.slane %v2083_v59, 5  ;;  %v1248_v59 = vld [vmem:[#allocation2 + $0x38] sm:$0xff]  ;;  %1267 = vperm.xlu0 %1649, %v1233_v49  }
 0x102   : > { %1121 = vst [vmem:[#allocation2 + $0x30] sm:$0xe] %v1113_v62  ;;  %v1229_v62 = vld [vmem:[%s2253_s1 + $0x8] sm:$0xff] }
 0x103   : > { %1096 = vst [vmem:[#allocation2 + $0x70] sm:$0xc0] %v1088_v27 }
 0x104   : > { %1101 = vst [vmem:[#allocation2 + $0x58] sm:$0x1] %v1089_v5 }
 0x105   : > { %v1158_v9 = vld.sshfl [vmem:[#allocation1 + $0x10] sm:$0xff pattern:$0x75316420]  ;;  %v1159_v26 = vld.sshfl [vmem:[#allocation1 + $0x18] sm:$0xff pattern:$0x75316420] }
 0x106   : > { %v1162_v53 = vrot.slane %v1158_v9, 1  ;;  %1190 = vst [vmem:[#allocation1 + $0x10] ss:$2 sm:$0xff] %v1179_v39  ;;  %v1163_v54 = vrot.slane %v1159_v26, 1  ;;  %v846_v26 = vrot.slane %v2032_v11, 5 }
 0x107   : > { %v1256_v30 = vld [vmem:[#allocation2 + $0x80] sm:$0xff]  ;;  %1122 = vst [vmem:[#allocation2 + $0x58] sm:$0xe] %v1114_v1 }
 0x108   : > { %1303 = vmatpush.msra.mxu0 %v1256_v30  ;;  %v1257_v51 = vld [vmem:[#allocation2 + $0xb8] sm:$0xff]  ;;  %1174 = vst [vmem:[#allocation2 + $0x20] sm:$0x3] %v1162_v53 }
 0x109   : > { %1332 = vmatpush.msra.mxu1 %v1257_v51  ;;  %1170 = vst [vmem:[#allocation2 + $0x30] sm:$0x80] %v1162_v53 }
 0x10a   : > { %1304 = vmatpush.msra.mxu0 %v1252_v13  ;;  %1175 = vst [vmem:[#allocation2 + $0x8] sm:$0x3] %v1163_v54 }
 0x10b   : > { %1171 = vst [vmem:[#allocation2 + $0x58] sm:$0x80] %v1163_v54  ;;  %1333 = vmatpush.msra.mxu1 %v1253_v58  ;;  %v1235_v58 = vld [vmem:[%s2254_s2 + $0x18] sm:$0xff] }
 0x10c   : > { %1097 = vst [vmem:[#allocation2 + $0xa0] sm:$0xc0] %v1089_v5  ;;  %1305 = vmatpush.msra.mxu0 %v1248_v59  ;;  %1277 = vperm.xlu1 %1650, %v1235_v58  }
 0x10d   : > { %v1193_v61 = vld.sshfl [vmem:[#allocation1 + $0x10] sm:$0xff pattern:$0x75316420]  ;;  %v1194_v0 = vld.sshfl [vmem:[#allocation1 + $0x18] sm:$0xff pattern:$0x75316420] }
 0x10e   : > { %v1197_v14 = vrot.slane %v1193_v61, 6  ;;  %1211 = vst [vmem:[#allocation1 + $0x10] ss:$2 sm:$0xff] %v1185_v56  ;;  %v1198_v52 = vrot.slane %v1194_v0, 6  ;;  %v1230_v61 = vld [vmem:[%s2253_s1 + $0x10] sm:$0xff]  ;;  %v1231_v0 = vld [vmem:[%s2253_s1 + $0x18] sm:$0xff] }
 0x10f   : > { %1064 = vst [vmem:[#allocation2 + $0x50] sm:$0x38] %v1056_v55 }
 0x110   : > { %1205 = vst [vmem:[#allocation2 + $0x20] sm:$0x1c] %v1197_v14  ;;  %v1254_v40 = vld [vmem:[#allocation2 + $0x30] sm:$0xff] }
 0x111   : > { %1206 = vst [vmem:[#allocation2 + $0x8] sm:$0x1c] %v1198_v52 }
 0x112   : > { %1065 = vst [vmem:[#allocation2 + $0x70] sm:$0x38] %v1057_v33  ;;  %v1255_v36 = vld [vmem:[#allocation2 + $0x58] sm:$0xff] }
 0x113   : > { %1066 = vst [vmem:[#allocation2 + $0xa0] sm:$0x38] %v1058_v50 }
 0x114   : > { %963 = vst [vmem:[#allocation2 + $0x88] sm:$0x3] %v951_v21 }
 0x115   : > { %v1214_v63 = vld.sshfl [vmem:[#allocation1 + $0x10] sm:$0xff pattern:$0x75316420]  ;;  %v1215_v16 = vld.sshfl [vmem:[#allocation1 + $0x18] sm:$0xff pattern:$0x75316420] }
 0x116   : > { %v1218_v18 = vrot.slane %v1214_v63, 3  ;;  %v1219_v35 = vrot.slane %v1215_v16, 3  ;;  %994 = vst [vmem:[#allocation2 + $0x88] sm:$0x1c] %v986_v41  ;;  %v1249_v44 = vld [vmem:[#allocation2 + $0x50] sm:$0xff] }
 0x117   : > { %1015 = vst [vmem:[#allocation2 + $0x88] sm:$0xe0] %v1007_v38  ;;  %1334 = vmatpush.msra.mxu1 %v1249_v44 }
 0x118   : > { %1226 = vst [vmem:[#allocation2 + $0x20] sm:$0xe0] %v1218_v18 }
 0x119   : > { %1227 = vst [vmem:[#allocation2 + $0x8] sm:$0xe0] %v1219_v35  ;;  %v1250_v25 = vld [vmem:[#allocation2 + $0x70] sm:$0xff] }
 0x11a   : > { %959 = vst [vmem:[#allocation2 + $0x60] sm:$0x80] %v951_v21  ;;  %v1251_v42 = vld [vmem:[#allocation2 + $0xa0] sm:$0xff] }
 0x11b   : > { %964 = vst [vmem:[#allocation2 + $0x90] sm:$0x3] %v952_v24 }
 0x11c   : > { %995 = vst [vmem:[#allocation2 + $0x90] sm:$0x1c] %v987_v28 }
 0x11d   : > { %1016 = vst [vmem:[#allocation2 + $0x90] sm:$0xe0] %v1008_v17 }
 0x11e   : > { %960 = vst [vmem:[#allocation2 + $0x28] sm:$0x80] %v952_v24  ;;  %v1244_v39 = vld [vmem:[#allocation2 + $0x88] sm:$0xff] }
 0x11f   : > { %v1258_v46 = vld [vmem:[#allocation2 + $0x20] sm:$0xff]  ;;  %965 = vst [vmem:[#allocation2 + $0x18] sm:$0x3] %v953_v60  ;;  %1306 = vmatpush.msra.mxu0 %v1244_v39 }
 0x120   : > { %1361 = vmatpush.msra.mxu2 %v1258_v46  ;;  %v1259_v20 = vld [vmem:[#allocation2 + $0x8] sm:$0xff]  ;;  %996 = vst [vmem:[#allocation2 + $0x18] sm:$0x1c] %v988_v37 }
 0x121   : > { %1390 = vmatpush.msra.mxu3 %v1259_v20  ;;  %1017 = vst [vmem:[#allocation2 + $0x18] sm:$0xe0] %v1009_v34 }
 0x122   : > { %1362 = vmatpush.msra.mxu2 %v1254_v40  ;;  %961 = vst [vmem:[#allocation2 + $0x40] sm:$0x80] %v953_v60 }
 0x123   : > { %1391 = vmatpush.msra.mxu3 %v1255_v36  ;;  %966 = vst [vmem:[#allocation2 + $0x98] sm:$0x3] %v954_v45 }
 0x124   : > { %1363 = vmatpush.msra.mxu2 %v1250_v25  ;;  %v1245_v30 = vld [vmem:[#allocation2 + $0x90] sm:$0xff]  ;;  %997 = vst [vmem:[#allocation2 + $0x98] sm:$0x1c] %v989_v48 }
 0x125   : > { %1392 = vmatpush.msra.mxu3 %v1251_v42  ;;  %1335 = vmatpush.msra.mxu1 %v1245_v30  ;;  %962 = vst [vmem:[#allocation2 + $0x78] sm:$0x80] %v954_v45 }
 0x126   : > { %889 = vst [vmem:[#allocation2 + $0x60] sm:$0x1] %v877_v12 }
 0x127   : > { %910 = vst [vmem:[#allocation2 + $0x60] sm:$0xe] %v902_v7 }
 0x128   : > { %v1246_v51 = vld [vmem:[#allocation2 + $0x18] sm:$0xff]  ;;  %885 = vst [vmem:[#allocation2 + $0xb0] sm:$0xc0] %v877_v12 }
 0x129   : > { %1364 = vmatpush.msra.mxu2 %v1246_v51  ;;  %890 = vst [vmem:[#allocation2 + $0x28] sm:$0x1] %v878_v3 }
 0x12a   : > { %911 = vst [vmem:[#allocation2 + $0x28] sm:$0xe] %v903_v57 }
 0x12b   : > { %v1247_v9 = vld [vmem:[#allocation2 + $0x98] sm:$0xff]  ;;  %886 = vst [vmem:[#allocation2] sm:$0xc0] %v878_v3 }
 0x12c   : > { %1393 = vmatpush.msra.mxu3 %v1247_v9  ;;  %912 = vst [vmem:[#allocation2 + $0x40] sm:$0xe] %v904_v22 }
 0x12d   : > { %892 = vst [vmem:[#allocation2 + $0x78] sm:$0x1] %v880_v4 }
 0x12e   : > { %v1240_v6 = vld [vmem:[#allocation2 + $0x60] sm:$0xff]  ;;  %913 = vst [vmem:[#allocation2 + $0x78] sm:$0xe] %v905_v32 }
 0x12f   : > { %1307 = vmatpush.msra.mxu0 %v1240_v6  ;;  %888 = vst [vmem:[#allocation2 + $0x48] sm:$0xc0] %v880_v4 }
 0x130   : > { %854 = vst [vmem:[#allocation2 + $0xb0] sm:$0x38] %v846_v26 }
 0x131   : > { %v1241_v53 = vld [vmem:[#allocation2 + $0x28] sm:$0xff]  ;;  %855 = vst [vmem:[#allocation2] sm:$0x38] %v847_v29 }
 0x132   : > { %1336 = vmatpush.msra.mxu1 %v1241_v53  ;;  %856 = vst [vmem:[#allocation2 + $0x10] sm:$0x38] %v848_v23 }
 0x133   : > { %v1242_v11 = vld [vmem:[#allocation2 + $0x40] sm:$0xff]  ;;  %857 = vst [vmem:[#allocation2 + $0x48] sm:$0x38] %v849_v31 }
 0x134   : > { %1365 = vmatpush.msra.mxu2 %v1242_v11 }
 0x135   : > { %v1243_v10 = vld [vmem:[#allocation2 + $0x78] sm:$0xff] }
 0x136   : > { %1394 = vmatpush.msra.mxu3 %v1243_v10 }
 0x137   : > { %v1236_v54 = vld [vmem:[#allocation2 + $0xb0] sm:$0xff] }
 0x138   : > { %1308 = vmatpush.msra.mxu0 %v1236_v54  ;;  %v1237_v13 = vld [vmem:[#allocation2] sm:$0xff] }
 0x139   : > { %1337 = vmatpush.msra.mxu1 %v1237_v13  ;;  %v1238_v27 = vld [vmem:[#allocation2 + $0x10] sm:$0xff]  ;;  %1546 = vmatmul.msk.f32.vlgmr.msra.gmra.mxu0 %vm1280_vm10, %v1228_v2 }
 0x13a   : > { %1366 = vmatpush.msra.mxu2 %v1238_v27  ;;  %v1239_v56 = vld [vmem:[#allocation2 + $0x48] sm:$0xff]  ;;  %1550 = vmatmul.msk.f32.vlgmr.msra.gmra.mxu1 %vm1280_vm10, %v1228_v2 }
 0x13b   : > { %1395 = vmatpush.msra.mxu3 %v1239_v56  ;;  %1554 = vmatmul.msk.f32.vlgmr.msra.gmra.mxu2 %vm1280_vm10, %v1228_v2 }
 0x13c   : > { %1558 = vmatmul.msk.f32.vlgmr.msra.gmra.mxu3 %vm1280_vm10, %v1228_v2 }
 0x141   : > { %1547 = vmatmul.msk.f32.gmra.mxu0 %vm1280_vm10, %v1229_v62  ;;  %v1273_v38 = vpop.permute.xlu1 %1272 }
 0x142   : > { %1551 = vmatmul.msk.f32.gmra.mxu1 %vm1280_vm10, %v1229_v62 }
 0x143   : > { %1555 = vmatmul.msk.f32.gmra.mxu2 %vm1280_vm10, %v1229_v62 }
 0x144   : > { %1559 = vmatmul.msk.f32.gmra.mxu3 %vm1280_vm10, %v1229_v62 }
 0x145   : > { %v1263_v14 = vpop.permute.xlu0 %1262 }
 0x149   : > { %1548 = vmatmul.msk.f32.gmra.mxu0 %vm1280_vm10, %v1230_v61 }
 0x14a   : > { %1552 = vmatmul.msk.f32.gmra.mxu1 %vm1280_vm10, %v1230_v61 }
 0x14b   : > { %1556 = vmatmul.msk.f32.gmra.mxu2 %vm1280_vm10, %v1230_v61 }
 0x14c   : > { %1560 = vmatmul.msk.f32.gmra.mxu3 %vm1280_vm10, %v1230_v61 }
 0x151   : > { %1549 = vmatmul.msk.f32.gmra.mxu0 %vm1280_vm10, %v1231_v0 }
 0x152   : > { %1553 = vmatmul.msk.f32.gmra.mxu1 %vm1280_vm10, %v1231_v0 }
 0x153   : > { %1557 = vmatmul.msk.f32.gmra.mxu2 %vm1280_vm10, %v1231_v0 }
 0x154   : > { %1561 = vmatmul.msk.f32.gmra.mxu3 %vm1280_vm10, %v1231_v0 }
 0x173   : > { %v1268_v63 = vpop.permute.xlu0 %1267 }
 0x17e   : > { %v1278_v44 = vpop.permute.xlu1 %1277 }
 0x1b6   : > { %v1310_v52 = vpop.f32.mrf.mxu0 }
 0x1b7   : > { %v1339_v5 = vpop.f32.mrf.mxu1  ;;  %v1311_v1 = vadd.f32 %v1310_v52, %v1263_v14 }
 0x1b8   : > { %v1340_v15 = vadd.f32 %v1339_v5, %v1263_v14 }
 0x1b9   : > { %1409 = vst [vmem:[%s2188_s28] sm:$0xff] %v1311_v1 }
 0x1ba   : > { %1410 = vst [vmem:[%s2188_s28 + $0x8] sm:$0xff] %v1340_v15 }
 0x1be   : > { %v1368_v16 = vpop.f32.mrf.mxu2  ;;  %v1313_v18 = vpop.f32.mrf.mxu0 }
 0x1bf   : > { %v1369_v35 = vadd.f32 %v1368_v16, %v1263_v14  ;;  %v1397_v55 = vpop.f32.mrf.mxu3  ;;  %v1342_v33 = vpop.f32.mrf.mxu1  ;;  %v1314_v50 = vadd.f32 %v1313_v18, %v1268_v63 }
 0x1c0   : > { %v1398_v21 = vadd.f32 %v1397_v55, %v1263_v14  ;;  %v1343_v41 = vadd.f32 %v1342_v33, %v1268_v63 }
 0x1c1   : > { %1411 = vst [vmem:[%s2188_s28 + $0x10] sm:$0xff] %v1369_v35 }
 0x1c2   : > { %1412 = vst [vmem:[%s2188_s28 + $0x18] sm:$0xff] %v1398_v21 }
 0x1c3   : > { %1413 = vst [vmem:[%s2188_s28 + $0x20] sm:$0xff] %v1314_v50 }
 0x1c4   : > { %1414 = vst [vmem:[%s2188_s28 + $0x28] sm:$0xff] %v1343_v41 }
 0x1c6   : > { %v1371_v24 = vpop.f32.mrf.mxu2  ;;  %v1316_v59 = vpop.f32.mrf.mxu0 }
 0x1c7   : > { %v1372_v28 = vadd.f32 %v1371_v24, %v1268_v63  ;;  %v1400_v46 = vpop.f32.mrf.mxu3  ;;  %v1317_v40 = vadd.f32 %v1316_v59, %v1273_v38  ;;  %v1345_v17 = vpop.f32.mrf.mxu1 }
 0x1c8   : > { %v1401_v20 = vadd.f32 %v1400_v46, %v1268_v63  ;;  %v1346_v36 = vadd.f32 %v1345_v17, %v1273_v38 }
 0x1c9   : > { %1415 = vst [vmem:[%s2188_s28 + $0x30] sm:$0xff] %v1372_v28 }
 0x1ca   : > { %1416 = vst [vmem:[%s2188_s28 + $0x38] sm:$0xff] %v1401_v20 }
 0x1cb   : > { %1417 = vst [vmem:[%s2188_s28 + $0x40] sm:$0xff] %v1317_v40 }
 0x1cc   : > { %1418 = vst [vmem:[%s2188_s28 + $0x48] sm:$0xff] %v1346_v36 }
 0x1ce   : > { %v1374_v60 = vpop.f32.mrf.mxu2  ;;  %v1319_v25 = vpop.f32.mrf.mxu0 }
 0x1cf   : > { %v1375_v37 = vadd.f32 %v1374_v60, %v1273_v38  ;;  %v1403_v42 = vpop.f32.mrf.mxu3  ;;  %v1320_v34 = vadd.f32 %v1319_v25, %v1278_v44  ;;  %v1348_v45 = vpop.f32.mrf.mxu1 }
 0x1d0   : > { %v1404_v39 = vadd.f32 %v1403_v42, %v1273_v38  ;;  %v1349_v48 = vadd.f32 %v1348_v45, %v1278_v44 }
 0x1d1   : > { %1419 = vst [vmem:[%s2188_s28 + $0x50] sm:$0xff] %v1375_v37 }
 0x1d2   : > { %1420 = vst [vmem:[%s2188_s28 + $0x58] sm:$0xff] %v1404_v39 }
 0x1d3   : > { %1421 = vst [vmem:[%s2188_s28 + $0x60] sm:$0xff] %v1320_v34 }
 0x1d4   : > { %1422 = vst [vmem:[%s2188_s28 + $0x68] sm:$0xff] %v1349_v48 }
 0x1d6   : > { %v1377_v47 = vpop.f32.mrf.mxu2 }
 0x1d7   : > { %v1378_v12 = vadd.f32 %v1377_v47, %v1278_v44  ;;  %v1406_v30 = vpop.f32.mrf.mxu3 }
 0x1d8   : > { %v1407_v7 = vadd.f32 %v1406_v30, %v1278_v44 }
 0x1d9   : > { %1423 = vst [vmem:[%s2188_s28 + $0x70] sm:$0xff] %v1378_v12 }
 0x1da   : > { %1424 = vst [vmem:[%s2188_s28 + $0x78] sm:$0xff] %v1407_v7 }
 0x1db   : > { %1678 = shalt.err (!%p1675_p7)
}
 0x1dc   : > { %s1754_s24 = smov 512   ;;  %s1755_s28 = smov 1024  }
 0x1dd   : > { %s1756_s6 = smov 32  }
 0x1de   : > { %1568 = dma.vmem_to_hbm [thread:$0]  (%p1828_p3), %s1441_s8, 2048, %s1443_s9, %s1426_s10, %s1754_s24, %s1755_s28, %s1756_s6  }
 0x1df PF: > { %p1574_p9 = scmp.ge.s32.totalorder %s1745_s19, 2  ;;  %s1457_s16 = sand.u32 1, %s1717_s12  }
 0x1e0   : > { %s1458_s7 = scalar_lea.sflag [#allocation4], %s1457_s16 }
 0x1e1   : > { %p1571_p10 = pnand %p1574_p9, %p1837_p8 }
 0x1e3   : > { %p1572_p11 = pneg %p1571_p10 }
 0x1e5   : > { %1712 = dma.done.wait (%p1572_p11), %s1458_s7, 2048  }
 0x1e6   : > { %1714 = vsyncadd (%p1572_p11), %s1458_s7, 4294965248  ;;  %s16_s19 = sadd.s32 1, %s1745_s19   ;;  %s2260_s12 = smov %s1721_s13 }
 0x1e7   : > { %p13_p12 = scmp.ge.s32.totalorder %s16_s19, 6   ;;  %s2261_s13 = smov %s1725_s14 }
 0x1e8   : > { %s2262_s14 = smov %s1846_s30  ;;  %s2263_s15 = smov %s1737_s17 }
 0x1e9   : > { %s2264_s16 = smov %s1741_s18  ;;  %s2265_s17 = smov %s2268_s22 }
 0x1ea   : > { %s2266_s18 = smov %s2272_s23  ;;  %15 = sbr.rel (!%p13_p12) target bundleno = 5 (0x5), region = 85 }
 0x1ef   :  { %1464 = vsyncpa [#allocation4], 1 }
 0x1f0   :  { %1466 = vsyncpa [#allocation4 + $0x1], 1 }

</bundles_post_ra>
